<compile_context>
chip_gen: v7x
topology: tpu7x:2x2x1
jax: 0.10.0
libtpu: 0.0.40
codegen_flags: <defaults>
</compile_context>

<pallas_src>
import functools

import jax
import jax.numpy as jnp
from jax import lax
from jax.experimental import pallas as pl
from jax.experimental.pallas import tpu as pltpu

EPS = 1e-12  # matches torch.nn.functional.normalize default eps


def _l2normalize(x, axis):
    # x / max(||x||, eps) written with rsqrt (EUP) and an eps^2 clamp.
    ss = jnp.sum(x * x, axis=axis, keepdims=True)
    return x * lax.rsqrt(jnp.maximum(ss, EPS * EPS))


def macrid_kernel(inv_temp, emb_size,
                  rating_ref, cates_ref, items_t_ref, w1_ref, b1_ref, w2_ref,
                  b2_ref, logits_ref, mulv_ref):
    k = pl.program_id(1)
    kfac = pl.num_programs(1)

    cates_k = cates_ref[0]                                       # (1, N)  f32
    # rating streamed in bf16; bf16 elementwise multiply (packs 2x on v6e/v7x).
    x_k = rating_ref[...] * cates_k.astype(jnp.bfloat16)         # (TB, N) bf16

    # encoder: Linear(N -> Hp) + tanh, Linear(Hp -> 2E); bf16 MXU, f32 accumulate.
    h1 = jnp.tanh(jnp.dot(x_k, w1_ref[...],
                          preferred_element_type=jnp.float32) + b1_ref[...])
    h = jnp.dot(h1.astype(jnp.bfloat16), w2_ref[...],
                preferred_element_type=jnp.float32) + b2_ref[...]

    mu = _l2normalize(h[:, :emb_size], axis=1)                   # (TB, E), unit rows
    mulv_ref[0, :, :emb_size] = mu
    mulv_ref[0, :, emb_size:] = h[:, emb_size:]

    # eval mode: z = mu; F.normalize(z) is a no-op (mu already unit norm).
    # 1/temp folded into the small (TB,E) operand instead of the (TB,N) logits.
    mu_s = (mu * inv_temp).astype(jnp.bfloat16)
    logits_k = jnp.dot(mu_s, items_t_ref[...],                   # (TB,E)@(E,N)
                       preferred_element_type=jnp.float32)
    contrib = jnp.exp(logits_k) * cates_k                        # (TB, N) f32

    # Accumulate probabilities directly into the K-resident logits output block.
    @pl.when(k == 0)
    def _init():
        logits_ref[...] = contrib

    @pl.when(k > 0)
    def _accumulate():
        logits_ref[...] += contrib

    @pl.when(k == kfac - 1)
    def _finalize():
        logits_ref[...] = jnp.log(logits_ref[...])


@functools.partial(jax.jit, static_argnames=("temp", "batch_tile"))
def macrid_vae_forward(rating, item_emb, k_emb, w1, b1, w2, b2, *, temp,
                       batch_tile=128):
    B, N = rating.shape
    K, E = k_emb.shape
    H = w1.shape[1]
    f32 = jnp.float32
    hp = lax.Precision.HIGHEST

    # Unit-norm mu/items bound |logits_k| by 1/temp; f32 exp overflows near 88.
    assert temp > 1.0 / 85.0, "temp too small: exp(logits_k) would overflow f32"

    # ---- one-time preprocessing, hoisted out of the kernel ----
    items_n = _l2normalize(item_emb.astype(f32), axis=1)          # (N, E)
    cores_n = _l2normalize(k_emb.astype(f32), axis=1)             # (K, E)
    rating_n = _l2normalize(rating.astype(f32), axis=1)           # (B, N)
    cates_logits = jnp.dot(items_n, cores_n.T, precision=hp) / temp
    cates = jax.nn.softmax(cates_logits, axis=-1)                 # (N, K)
    cates_rows = cates.T.reshape(K, 1, N)                         # stream 1 row per k

    # Zero-pad hidden dim to a full 128-lane width (identical math).
    # TODO(synk): padding doubles w1's bf16 DMA/VMEM footprint and first-matmul
    # MXU work; at production N consider shipping w1 unpadded (block == full
    # array dims is legal) and tolerating the sub-128-lane intermediate.
    Hp = ((H + 127) // 128) * 128
    w1p = jnp.zeros((N, Hp), f32).at[:, :H].set(w1.astype(f32))
    b1p = jnp.zeros((1, Hp), f32).at[:, :H].set(b1.reshape(1, H).astype(f32))
    w2p = jnp.zeros((Hp, 2 * E), f32).at[:H, :].set(w2.astype(f32))
    b2p = b2.reshape(1, 2 * E).astype(f32)

    # bf16 MXU operands (cast once here); accumulation stays f32 in the kernel.
    # items pre-transposed to (E, N): decoder is a plain (TB,E)@(E,N) matmul.
    items_t_b = items_n.T.astype(jnp.bfloat16)                    # (E, N)
    w1_b = w1p.astype(jnp.bfloat16)
    w2_b = w2p.astype(jnp.bfloat16)
    rating_b = rating_n.astype(jnp.bfloat16)                      # halves DMA/VMEM

    TB = min(batch_tile, B)
    assert B % TB == 0, "batch must be divisible by the batch tile"
    nb = B // TB   # keep nb >= 2 on v7x so the "parallel" axis splits across TCs

    def _const_spec(shape):
        # Constant-index block: identical every grid step -> single-buffered.
        return pl.BlockSpec(shape, lambda b, k: (0,) * len(shape),
                            pipeline_mode=pl.Buffered(1))

    grid_spec = pltpu.PrefetchScalarGridSpec(
        num_scalar_prefetch=0,
        grid=(nb, K),                               # K last: logits acc stays resident
        in_specs=[
            pl.BlockSpec((TB, N), lambda b, k: (b, 0)),          # rating (bf16)
            pl.BlockSpec((1, 1, N), lambda b, k: (k, 0, 0)),     # cates row k (f32)
            _const_spec((E, N)),                                 # items^T (bf16)
            _const_spec((N, Hp)),                                # w1      (bf16)
            _const_spec((1, Hp)),                                # b1
            _const_spec((Hp, 2 * E)),                            # w2      (bf16)
            _const_spec((1, 2 * E)),                             # b2
        ],
        out_specs=[
            pl.BlockSpec((TB, N), lambda b, k: (b, 0)),          # logits / prob acc
            pl.BlockSpec((1, TB, 2 * E), lambda b, k: (k, b, 0)),# mu || logvar
        ],
    )

    # Scoped-VMEM budget from the actual block footprint (incl. matmul temps),
    # clamped to the chip's physical VMEM (v7x has only 64 MiB per TC).
    vmem_bytes = (
        2 * TB * N * 2            # rating block (bf16, double-buffered)
        + 2 * N * 4               # cates row (f32, double-buffered)
        + E * N * 2               # items^T (bf16, single-buffered)
        + N * Hp * 2              # w1 (bf16, single-buffered)
        + Hp * 2 * E * 2          # w2 (bf16, single-buffered)
        + (Hp + 2 * E) * 4        # biases
        + 2 * TB * N * 4          # logits output block (f32)
        + 2 * TB * 2 * E * 4      # mu||logvar output block (double-buffered)
        + 3 * TB * N * 4          # (TB,N) f32 matmul / exp temporaries
        + TB * Hp * 4             # (TB,Hp) encoder hidden temporary
    )
    try:
        phys_vmem = int(getattr(pltpu.get_tpu_info(), "vmem_capacity_bytes",
                                64 * 2**20))
    except Exception:  # conservative fallback if the query is unavailable
        phys_vmem = 64 * 2**20
    vmem_limit = int(min(phys_vmem - 8 * 2**20,
                         max(32 * 2**20, 2 * vmem_bytes)))

    out_shape = (
        jax.ShapeDtypeStruct((B, N), f32),              # logits
        jax.ShapeDtypeStruct((K, B, 2 * E), f32),       # mu || logvar per factor
    )

    kern = functools.partial(macrid_kernel, float(1.0 / temp), int(E))

    logits, mulv = pl.pallas_call(
        kern,
        out_shape=out_shape,
        grid_spec=grid_spec,
        compiler_params=pltpu.CompilerParams(
            dimension_semantics=("parallel", "arbitrary"),
            vmem_limit_bytes=vmem_limit),
    )(rating_b, cates_rows, items_t_b, w1_b, b1p, w2_b, b2p)

    mulist = [mulv[i, :, :E] for i in range(K)]
    logvarlist = [mulv[i, :, E:] for i in range(K)]
    return logits, mulist, logvarlist


def ref_forward(rating, item_emb, k_emb, w1, b1, w2, b2, *, temp):
    """Pure-JAX reference mirroring the PyTorch eval-mode forward (f32, HIGHEST)."""
    E = k_emb.shape[1]
    hp = lax.Precision.HIGHEST

    def l2n(x, axis):
        n = jnp.sqrt(jnp.sum(x * x, axis=axis, keepdims=True))
        return x / jnp.maximum(n, EPS)

    cores = l2n(k_emb, axis=1)
    items = l2n(item_emb, axis=1)
    r = l2n(rating, axis=1)
    cates = jax.nn.softmax(jnp.dot(items, cores.T, precision=hp) / temp, axis=-1)
    probs, mus, lvs = None, [], []
    for k in range(k_emb.shape[0]):
        cates_k = cates[:, k][None, :]
        x_k = r * cates_k
        h = jnp.dot(jnp.tanh(jnp.dot(x_k, w1, precision=hp) + b1), w2,
                    precision=hp) + b2
        mu = l2n(h[:, :E], axis=1)
        mus.append(mu)
        lvs.append(h[:, E:])
        logits_k = jnp.dot(mu, items.T, precision=hp) / temp
        probs_k = jnp.exp(logits_k) * cates_k
        probs = probs_k if probs is None else probs + probs_k
    return jnp.log(probs), mus, lvs


if __name__ == "__main__":
    # Small deterministic configuration (batch >= 128 to keep MXU rows occupied,
    # nb = 2 batch tiles so the "parallel" axis can split across v7x TCs).
    B = 256
    N_ITEMS = 512
    HIDDEN = [64, 128]     # args.hidden_dim -> H = 64, embedding_size E = 128
    KFAC = 4
    TEMP = 0.2
    H, E = HIDDEN[0], HIDDEN[1]

    key = jax.random.PRNGKey(0)
    ks = jax.random.split(key, 8)

    def xavier_normal(k, shape):
        std = (2.0 / (shape[0] + shape[1])) ** 0.5
        return std * jax.random.normal(k, shape, jnp.float32)

    item_emb = xavier_normal(ks[0], (N_ITEMS, E))
    k_emb = xavier_normal(ks[1], (KFAC, E))
    w1 = xavier_normal(ks[2], (N_ITEMS, H))        # Linear(N_ITEMS -> H)
    b1 = 0.001 * jax.random.normal(ks[3], (H,), jnp.float32)
    w2 = xavier_normal(ks[4], (H, 2 * E))          # Linear(H -> 2E)
    b2 = 0.001 * jax.random.normal(ks[5], (2 * E,), jnp.float32)

    # implicit-feedback style rating matrix (nonnegative, sparse-ish)
    rating = (jax.random.uniform(ks[6], (B, N_ITEMS)) < 0.1).astype(jnp.float32)

    logits, mulist, logvarlist = macrid_vae_forward(
        rating, item_emb, k_emb, w1, b1, w2, b2, temp=TEMP)
    jax.block_until_ready(logits)

    # correctness check against pure-JAX reference
    logits_r, mus_r, lvs_r = ref_forward(
        rating, item_emb, k_emb, w1, b1, w2, b2, temp=TEMP)

    # logits tolerance 1e-2: kernel feeds bf16 operands to the MXU (f32 accumulate)
    # and streams the rating matrix in bf16, while the reference is f32 HIGHEST.
    assert jnp.allclose(logits, logits_r, rtol=1e-2, atol=1e-2), "logits mismatch"
    for k in range(KFAC):
        assert jnp.allclose(mulist[k], mus_r[k], rtol=5e-3, atol=5e-3), "mu mismatch"
        assert jnp.allclose(logvarlist[k], lvs_r[k], rtol=5e-3, atol=5e-3), "logvar mismatch"

    print("KERNEL_OK")
</pallas_src>

<mosaic_0001>
module attributes {stable_mosaic.version = 11 : i64} {
  func.func @macrid_kernel(%arg0: i32, %arg1: i32, %arg2: memref<128x512xbf16, #tpu.memory_space<vmem>>, %arg3: memref<1x1x512xf32, #tpu.memory_space<vmem>>, %arg4: memref<128x512xbf16, #tpu.memory_space<vmem>>, %arg5: memref<512x128xbf16, #tpu.memory_space<vmem>>, %arg6: memref<1x128xf32, #tpu.memory_space<vmem>>, %arg7: memref<128x256xbf16, #tpu.memory_space<vmem>>, %arg8: memref<1x256xf32, #tpu.memory_space<vmem>>, %arg9: memref<128x512xf32, #tpu.memory_space<vmem>>, %arg10: memref<1x128x256xf32, #tpu.memory_space<vmem>>) attributes {dimension_semantics = [#tpu.dimension_semantics<parallel>, #tpu.dimension_semantics<arbitrary>], iteration_bounds = array<i64: 2, 4>, scalar_prefetch = 0 : i64, scratch_operands = 0 : i64, tpu.core_type = #tpu.core_type<tc>, window_params = [{transform_indices = @transform_0, window_bounds = array<i64: 128, 512>}, {transform_indices = @transform_1, window_bounds = array<i64: 1, 1, 512>}, {pipeline_mode = #tpu.pipeline_mode<synchronous>, transform_indices = @transform_2, window_bounds = array<i64: 128, 512>}, {pipeline_mode = #tpu.pipeline_mode<synchronous>, transform_indices = @transform_3, window_bounds = array<i64: 512, 128>}, {pipeline_mode = #tpu.pipeline_mode<synchronous>, transform_indices = @transform_4, window_bounds = array<i64: 1, 128>}, {pipeline_mode = #tpu.pipeline_mode<synchronous>, transform_indices = @transform_5, window_bounds = array<i64: 128, 256>}, {pipeline_mode = #tpu.pipeline_mode<synchronous>, transform_indices = @transform_6, window_bounds = array<i64: 1, 256>}, {transform_indices = @transform_7, window_bounds = array<i64: 128, 512>}, {transform_indices = @transform_8, window_bounds = array<i64: 1, 128, 256>}]} {
    %c0 = arith.constant 0 : index
    %c0_0 = arith.constant 0 : index
    %c0_1 = arith.constant 0 : index
    %0 = vector.load %arg3[%c0, %c0_0, %c0_1] : memref<1x1x512xf32, #tpu.memory_space<vmem>>, vector<1x1x512xf32>
    %1 = vector.shape_cast %0 : vector<1x1x512xf32> to vector<1x512xf32>
    %c0_2 = arith.constant 0 : index
    %c0_3 = arith.constant 0 : index
    %2 = vector.load %arg2[%c0_2, %c0_3] : memref<128x512xbf16, #tpu.memory_space<vmem>>, vector<128x512xbf16>
    %3 = arith.truncf %1 : vector<1x512xf32> to vector<1x512xbf16>
    %4 = vector.broadcast %3 : vector<1x512xbf16> to vector<128x512xbf16>
    %5 = arith.mulf %2, %4 : vector<128x512xbf16>
    %c0_4 = arith.constant 0 : index
    %c0_5 = arith.constant 0 : index
    %6 = vector.load %arg5[%c0_4, %c0_5] : memref<512x128xbf16, #tpu.memory_space<vmem>>, vector<512x128xbf16>
    %cst = arith.constant dense<0.000000e+00> : vector<128x128xf32>
    %7 = tpu.matmul %5, %6, %cst {dimension_numbers = #tpu.dot_dimension_numbers<[1], [0], [0], [1], [0, 0, 1, 1], [], []>} : vector<128x512xbf16>, vector<512x128xbf16>, vector<128x128xf32> -> vector<128x128xf32>
    %c0_6 = arith.constant 0 : index
    %c0_7 = arith.constant 0 : index
    %8 = vector.load %arg6[%c0_6, %c0_7] : memref<1x128xf32, #tpu.memory_space<vmem>>, vector<1x128xf32>
    %9 = vector.broadcast %8 : vector<1x128xf32> to vector<128x128xf32>
    %10 = arith.addf %7, %9 : vector<128x128xf32>
    %11 = math.tanh %10 : vector<128x128xf32>
    %12 = arith.truncf %11 : vector<128x128xf32> to vector<128x128xbf16>
    %c0_8 = arith.constant 0 : index
    %c0_9 = arith.constant 0 : index
    %13 = vector.load %arg7[%c0_8, %c0_9] : memref<128x256xbf16, #tpu.memory_space<vmem>>, vector<128x256xbf16>
    %cst_10 = arith.constant dense<0.000000e+00> : vector<128x256xf32>
    %14 = tpu.matmul %12, %13, %cst_10 {dimension_numbers = #tpu.dot_dimension_numbers<[1], [0], [0], [1], [0, 0, 1, 1], [], []>} : vector<128x128xbf16>, vector<128x256xbf16>, vector<128x256xf32> -> vector<128x256xf32>
    %c0_11 = arith.constant 0 : index
    %c0_12 = arith.constant 0 : index
    %15 = vector.load %arg8[%c0_11, %c0_12] : memref<1x256xf32, #tpu.memory_space<vmem>>, vector<1x256xf32>
    %16 = vector.broadcast %15 : vector<1x256xf32> to vector<128x256xf32>
    %17 = arith.addf %14, %16 : vector<128x256xf32>
    %18 = vector.extract_strided_slice %17 {offsets = [0, 0], sizes = [128, 128], strides = [1, 1]} : vector<128x256xf32> to vector<128x128xf32>
    %19 = arith.mulf %18, %18 : vector<128x128xf32>
    %cst_13 = arith.constant dense<0.000000e+00> : vector<128xf32>
    %20 = vector.multi_reduction <add>, %19, %cst_13 [1] : vector<128x128xf32> to vector<128xf32>
    %21 = vector.shape_cast %20 : vector<128xf32> to vector<128x1xf32>
    %cst_14 = arith.constant 1.000000e-24 : f32
    %22 = vector.broadcast %cst_14 : f32 to vector<128x1xf32>
    %23 = arith.maximumf %21, %22 : vector<128x1xf32>
    %24 = math.rsqrt %23 : vector<128x1xf32>
    %25 = vector.broadcast %24 : vector<128x1xf32> to vector<128x128xf32>
    %26 = arith.mulf %18, %25 : vector<128x128xf32>
    %c0_15 = arith.constant 0 : index
    %c0_16 = arith.constant 0 : index
    %c0_17 = arith.constant 0 : index
    %27 = vector.load %arg10[%c0_15, %c0_16, %c0_17] : memref<1x128x256xf32, #tpu.memory_space<vmem>>, vector<1x128x128xf32>
    %28 = vector.shape_cast %27 : vector<1x128x128xf32> to vector<128x128xf32>
    %29 = vector.shape_cast %26 : vector<128x128xf32> to vector<1x128x128xf32>
    tpu.vector_store %arg10[%c0_15, %c0_16, %c0_17], %29 {strides = array<i32>} : memref<1x128x256xf32, #tpu.memory_space<vmem>>, vector<1x128x128xf32>,
    %30 = vector.extract_strided_slice %17 {offsets = [0, 128], sizes = [128, 128], strides = [1, 1]} : vector<128x256xf32> to vector<128x128xf32>
    %c0_18 = arith.constant 0 : index
    %c0_19 = arith.constant 0 : index
    %c128 = arith.constant 128 : index
    %31 = vector.load %arg10[%c0_18, %c0_19, %c128] : memref<1x128x256xf32, #tpu.memory_space<vmem>>, vector<1x128x128xf32>
    %32 = vector.shape_cast %31 : vector<1x128x128xf32> to vector<128x128xf32>
    %33 = vector.shape_cast %30 : vector<128x128xf32> to vector<1x128x128xf32>
    tpu.vector_store %arg10[%c0_18, %c0_19, %c128], %33 {strides = array<i32>} : memref<1x128x256xf32, #tpu.memory_space<vmem>>, vector<1x128x128xf32>,
    %cst_20 = arith.constant 5.000000e+00 : f32
    %34 = vector.broadcast %cst_20 : f32 to vector<128x128xf32>
    %35 = arith.mulf %26, %34 : vector<128x128xf32>
    %36 = arith.truncf %35 : vector<128x128xf32> to vector<128x128xbf16>
    %c0_21 = arith.constant 0 : index
    %c0_22 = arith.constant 0 : index
    %37 = vector.load %arg4[%c0_21, %c0_22] : memref<128x512xbf16, #tpu.memory_space<vmem>>, vector<128x512xbf16>
    %cst_23 = arith.constant dense<0.000000e+00> : vector<128x512xf32>
    %38 = tpu.matmul %36, %37, %cst_23 {dimension_numbers = #tpu.dot_dimension_numbers<[1], [0], [0], [1], [0, 0, 1, 1], [], []>} : vector<128x128xbf16>, vector<128x512xbf16>, vector<128x512xf32> -> vector<128x512xf32>
    %39 = math.exp %38 : vector<128x512xf32>
    %40 = vector.broadcast %1 : vector<1x512xf32> to vector<128x512xf32>
    %41 = arith.mulf %39, %40 : vector<128x512xf32>
    %c0_i32 = arith.constant 0 : i32
    %42 = arith.cmpi eq, %arg1, %c0_i32 : i32
    %43 = arith.extui %42 : i1 to i32
    %c0_i32_24 = arith.constant 0 : i32
    %44 = arith.cmpi ne, %43, %c0_i32_24 : i32
    scf.if %44 {
      %c0_28 = arith.constant 0 : index
      %c0_29 = arith.constant 0 : index
      %51 = vector.load %arg9[%c0_28, %c0_29] : memref<128x512xf32, #tpu.memory_space<vmem>>, vector<128x512xf32>
      tpu.vector_store %arg9[%c0_28, %c0_29], %41 {strides = array<i32>} : memref<128x512xf32, #tpu.memory_space<vmem>>, vector<128x512xf32>,
    } else {
    }
    %c0_i32_25 = arith.constant 0 : i32
    %45 = arith.cmpi sgt, %arg1, %c0_i32_25 : i32
    %46 = arith.extui %45 : i1 to i32
    %c0_i32_26 = arith.constant 0 : i32
    %47 = arith.cmpi ne, %46, %c0_i32_26 : i32
    scf.if %47 {
      %c0_28 = arith.constant 0 : index
      %c0_29 = arith.constant 0 : index
      %51 = vector.load %arg9[%c0_28, %c0_29] : memref<128x512xf32, #tpu.memory_space<vmem>>, vector<128x512xf32>
      %52 = arith.addf %51, %41 : vector<128x512xf32>
      %c0_30 = arith.constant 0 : index
      %c0_31 = arith.constant 0 : index
      %53 = vector.load %arg9[%c0_30, %c0_31] : memref<128x512xf32, #tpu.memory_space<vmem>>, vector<128x512xf32>
      tpu.vector_store %arg9[%c0_30, %c0_31], %52 {strides = array<i32>} : memref<128x512xf32, #tpu.memory_space<vmem>>, vector<128x512xf32>,
    } else {
    }
    %c3_i32 = arith.constant 3 : i32
    %48 = arith.cmpi eq, %arg1, %c3_i32 : i32
    %49 = arith.extui %48 : i1 to i32
    %c0_i32_27 = arith.constant 0 : i32
    %50 = arith.cmpi ne, %49, %c0_i32_27 : i32
    scf.if %50 {
      %c0_28 = arith.constant 0 : index
      %c0_29 = arith.constant 0 : index
      %51 = vector.load %arg9[%c0_28, %c0_29] : memref<128x512xf32, #tpu.memory_space<vmem>>, vector<128x512xf32>
      %52 = math.log %51 : vector<128x512xf32>
      %c0_30 = arith.constant 0 : index
      %c0_31 = arith.constant 0 : index
      %53 = vector.load %arg9[%c0_30, %c0_31] : memref<128x512xf32, #tpu.memory_space<vmem>>, vector<128x512xf32>
      tpu.vector_store %arg9[%c0_30, %c0_31], %52 {strides = array<i32>} : memref<128x512xf32, #tpu.memory_space<vmem>>, vector<128x512xf32>,
    } else {
    }
    return
  }
  func.func @transform_0(%arg0: i32, %arg1: i32) -> (i32, i32) {
    %c0_i32 = arith.constant 0 : i32
    %c0_i32_0 = arith.constant 0 : i32
    return %arg0, %c0_i32 : i32, i32
  }
  func.func @transform_1(%arg0: i32, %arg1: i32) -> (i32, i32, i32) {
    %c0_i32 = arith.constant 0 : i32
    %c0_i32_0 = arith.constant 0 : i32
    %c0_i32_1 = arith.constant 0 : i32
    return %arg1, %c0_i32, %c0_i32_0 : i32, i32, i32
  }
  func.func @transform_2(%arg0: i32, %arg1: i32) -> (i32, i32) {
    %c0_i32 = arith.constant 0 : i32
    %c0_i32_0 = arith.constant 0 : i32
    %c0_i32_1 = arith.constant 0 : i32
    return %c0_i32, %c0_i32_0 : i32, i32
  }
  func.func @transform_3(%arg0: i32, %arg1: i32) -> (i32, i32) {
    %c0_i32 = arith.constant 0 : i32
    %c0_i32_0 = arith.constant 0 : i32
    %c0_i32_1 = arith.constant 0 : i32
    return %c0_i32, %c0_i32_0 : i32, i32
  }
  func.func @transform_4(%arg0: i32, %arg1: i32) -> (i32, i32) {
    %c0_i32 = arith.constant 0 : i32
    %c0_i32_0 = arith.constant 0 : i32
    %c0_i32_1 = arith.constant 0 : i32
    return %c0_i32, %c0_i32_0 : i32, i32
  }
  func.func @transform_5(%arg0: i32, %arg1: i32) -> (i32, i32) {
    %c0_i32 = arith.constant 0 : i32
    %c0_i32_0 = arith.constant 0 : i32
    %c0_i32_1 = arith.constant 0 : i32
    return %c0_i32, %c0_i32_0 : i32, i32
  }
  func.func @transform_6(%arg0: i32, %arg1: i32) -> (i32, i32) {
    %c0_i32 = arith.constant 0 : i32
    %c0_i32_0 = arith.constant 0 : i32
    %c0_i32_1 = arith.constant 0 : i32
    return %c0_i32, %c0_i32_0 : i32, i32
  }
  func.func @transform_7(%arg0: i32, %arg1: i32) -> (i32, i32) {
    %c0_i32 = arith.constant 0 : i32
    %c0_i32_0 = arith.constant 0 : i32
    return %arg0, %c0_i32 : i32, i32
  }
  func.func @transform_8(%arg0: i32, %arg1: i32) -> (i32, i32, i32) {
    %c0_i32 = arith.constant 0 : i32
    %c0_i32_0 = arith.constant 0 : i32
    return %arg1, %arg0, %c0_i32 : i32, i32, i32
  }
}

</mosaic_0001>

<bundles_post_ra>
// kernel: macrid_vae_forward.1
= control target key start
LH: loop header
LB: loop body
LE: loop exit
PB: predicated region body
PF: predicated region fallthrough
CT: control target
= control target key end

     0   :  { %14 = vsyncpa [#allocation3], 0  ;;  %s5096_s0 = inlined_call_operand.vmem [shape: bf16[256,512], index: 0, kind: input, shape index: {}]   ;;  %s5097_s1 = inlined_call_operand.vmem [shape: f32[4,1,512], index: 1, kind: input, shape index: {}]   ;;  %s5098_s2 = inlined_call_operand.vmem [shape: bf16[128,512], index: 2, kind: input, shape index: {}]   ;;  %s5099_s3 = inlined_call_operand.vmem [shape: bf16[512,128], index: 3, kind: input, shape index: {}]   ;;  %s5100_s4 = inlined_call_operand.vmem [shape: f32[1,128], index: 4, kind: input, shape index: {}]   ;;  %s5101_s5 = inlined_call_operand.vmem [shape: bf16[128,256], index: 5, kind: input, shape index: {}]   ;;  %s5102_s6 = inlined_call_operand.vmem [shape: f32[1,256], index: 6, kind: input, shape index: {}]   ;;  %s5103_s7 = inlined_call_operand.hbm [shape: f32[256,512], index: 7, kind: output, shape index: {0}]   ;;  %s5104_s8 = inlined_call_operand.vmem [shape: f32[4,256,256], index: 8, kind: output, shape index: {1}]  }
   0x1   :  { %16 = vsyncpa [#allocation3 + $0x1], 0  ;;  %s3728_s27 = smov 0   ;;  %s3730_s28 = smov 0  }
   0x2   :  { %s3732_s29 = smov 0   ;;  %s3734_s30 = smov 0  }
   0x3   :  { %s3736_s9 = smov 0   ;;  %s3738_s10 = smov 0  }
   0x4   :  { %s3740_s11 = smov 0   ;;  %s3742_s12 = smov 0  }
   0x5 LB: > { %5111 = sst [smem:[#allocation5_spill]] %s3669_s10  ;;  %s2800_s13 = sadd.s32 4294967295, %s3677_s12   ;;  %s3677_s12 = sphi %s3742_s12, %s22_s12   ;;  %s3673_s11 = sphi %s3740_s11, %s5157_s11   ;;  %s3669_s10 = sphi %s3738_s10, %s5156_s10   ;;  %s3665_s9 = sphi %s3736_s9, %s5161_s9   ;;  %s3661_s30 = sphi %s3734_s30, %s5154_s30   ;;  %s3657_s29 = sphi %s3732_s29, %s5160_s29   ;;  %s3653_s28 = sphi %s3730_s28, %s5159_s28   ;;  %s3649_s27 = sphi %s3728_s27, %s5158_s27  }
   0x6   : > { %5112 = sst [smem:[#allocation6_spill]] %s3673_s11  ;;  %s2801_s14 = sadd.s32 4294967294, %s3677_s12  }
   0x7   : > { %s31_s15 = sadd.s32 1, %s3669_s10  ;;  %s34_s16 = sadd.s32 1, %s3673_s11 }
   0x8   : > { %p32_p0 = scmp.ge.s32.totalorder %s31_s15, 4  ;;  %p208_p1 = scmp.ne.s32.totalorder %s3657_s29, %s3653_s28 }
   0x9   : > { %p209_p2 = scmp.eq.s32.totalorder %s2800_s13, 7  ;;  %p214_p4 = scmp.ne.s32.totalorder %s3653_s28, %s3649_s27 }
   0xa   : > { %s5163_s15 = smov (%p32_p0, %s31_s15), 0  ;;  %s5165_s16 = smov (!%p32_p0, %s34_s16), %s3673_s11 }
   0xb   : > { %5113 = sst [smem:[#allocation7_spill]] %s5163_s15  ;;  %p3777_p3 = por %p209_p2, %p208_p1 }
   0xc   : > { %p36_p5 = scmp.ge.s32.totalorder %s5165_s16, 2  ;;  %p215_p6 = scmp.eq.s32.totalorder %s2801_s14, 7 }
   0xd   : > { %p2804_p7 = scmp.ge.s32.totalorder %s3677_s12, 1  ;;  %p293_p8 = scmp.lt.s32.totalorder %s3677_s12, 9 }
   0xe   : > { %s5167_s16 = smov (%p36_p5, %s5165_s16), 0  ;;  %p3787_p9 = por %p215_p6, %p214_p4 }
   0xf   : > { %5115 = sst [smem:[#allocation8_spill]] %s5167_s16  ;;  %p294_p10 = pnand %p2804_p7, %p293_p8 }
  0x10   : > { %s195_s19 = ssub.s32 %s3673_s11, %s5167_s16  ;;  %s198_s20 = sadd.s32 1, %s3657_s29 }
  0x11   : > { %p196_p11 = scmp.eq.s32.totalorder %s195_s19, 0  ;;  %297 = sbr.rel (%p294_p10) target bundleno = 1145 (0x479), region = 48 }
  0x13   : > { %s3795_s21 = scalar_select %p196_p11, %s3657_s29, %s198_s20  }
  0x15   : > { %5117 = sst [smem:[#allocation9_spill]] %s3795_s21 }
  0x18   : > { %v3159_v0 = vld [vmem:[%s5099_s3 + $0x40] sm:$0xff]   ;;  %s5105_s24 = sand.u32 1, %s3653_s28   ;;  %v3161_v2 = vld [vmem:[%s5099_s3 + $0x48] sm:$0xff]   ;;  %s2806_s23 = sshll.u32 %s3665_s9, 4  ;;  %v3163_v4 = vld [vmem:[%s5099_s3 + $0x50] sm:$0xff]   ;;  %v400_v7 = vlaneseq }
  0x19   : > { %v3160_v1 = vld [vmem:[%s5099_s3] sm:$0xff]   ;;  %s3806_s13 = sshll.u32 %s5105_s24, 9  ;;  %3069 = vmatprep.subr.bf16.mxu1 %v3159_v0  ;;  %2941 = vmatprep.subr.bf16.mxu0 %v3159_v0  ;;  %v3162_v3 = vld [vmem:[%s5099_s3 + $0x8] sm:$0xff]   ;;  %p343_p12 = scmp.lt.s32.totalorder %s2806_s23, 31  ;;  %v3164_v5 = vld [vmem:[%s5099_s3 + $0x10] sm:$0xff]  }
  0x1a   : > { %3077 = vmatpush3.bf16.msra.mxu1 %v3160_v1  ;;  %2942 = vmatpush3.bf16.msra.mxu0 %v3160_v1  ;;  %p349_p13 = scmp.lt.s32.totalorder %s3661_s30, 3  ;;  %v3165_v6 = vld [vmem:[%s5099_s3 + $0x58] sm:$0xff]   ;;  %v3167_v9 = vld [vmem:[%s5099_s3 + $0x60] sm:$0xff]   ;;  %v3837_v10 = vshrl.u32 %v400_v7, 7  ;;  %v3169_v14 = vld [vmem:[%s5099_s3 + $0x68] sm:$0xff]   ;;  %p2929_p0 = scmp.ne.s32.totalorder %s3661_s30, 0 }
  0x1b   : > { %3070 = vmatprep.subr.bf16.mxu1 %v3161_v2  ;;  %2943 = vmatprep.subr.bf16.mxu0 %v3161_v2  ;;  %s5169_s23 = smov (!%p343_p12, %s2806_s23), 31  ;;  %v3166_v8 = vld [vmem:[%s5099_s3 + $0x18] sm:$0xff]   ;;  %v3168_v12 = vld [vmem:[%s5099_s3 + $0x20] sm:$0xff]   ;;  %v3170_v18 = vld [vmem:[%s5099_s3 + $0x28] sm:$0xff]  }
  0x1c   : > { %s350_s19 = scalar_select %p349_p13, %s3661_s30, 3  ;;  %v3843_v11 = vsub.s32 0, %v3837_v10  ;;  %v406_v13 = vsub.s32 1, %v3837_v10  ;;  %v3171_v21 = vld [vmem:[%s5099_s3 + $0x70] sm:$0xff]   ;;  %v3173_v25 = vld [vmem:[%s5099_s3 + $0x78] sm:$0xff]   ;;  %v410_v33 = vsub.s32 2, %v3837_v10 }
  0x1d   : > { %s2811_s26 = sshll.u32 %s5169_s23, 1  ;;  %v3172_v22 = vld [vmem:[%s5099_s3 + $0x30] sm:$0xff]   ;;  %v414_v34 = vsub.s32 3, %v3837_v10  ;;  %v3174_v35 = vld [vmem:[%s5099_s3 + $0x38] sm:$0xff]   ;;  %v3175_v40 = vld [vmem:[%s5099_s3 + $0xc0] sm:$0xff]  }
  0x1e   : > { %3078 = vmatpush3.bf16.msra.mxu1 %v3162_v3  ;;  %2944 = vmatpush3.bf16.msra.mxu0 %v3162_v3  ;;  %s2809_s25 = sshll.u32 %s350_s19, 2  ;;  %s2812_s24 = sshll.u32 %s350_s19, 6  ;;  %v3176_v45 = vld [vmem:[%s5099_s3 + $0x80] sm:$0xff]   ;;  %v3177_v46 = vld [vmem:[%s5099_s3 + $0xc8] sm:$0xff]   ;;  %v3179_v59 = vld [vmem:[%s5099_s3 + $0xd0] sm:$0xff]  }
  0x1f   : > { %3071 = vmatprep.subr.bf16.mxu1 %v3163_v4  ;;  %2945 = vmatprep.subr.bf16.mxu0 %v3163_v4  ;;  %s3835_s20 = sadd.s32 %s2812_s24, %s2811_s26  ;;  %s352_s21 = scalar_lea.vmem %s5097_s1, %s2809_s25  ;;  %v3178_v56 = vld [vmem:[%s5099_s3 + $0x88] sm:$0xff]   ;;  %v3180_v7 = vld [vmem:[%s5099_s3 + $0x90] sm:$0xff]  }
  0x20   : > { %s2938_s26 = sshll.u32 %s5169_s23, 4  ;;  %v366_v15 = vld [vmem:[%s352_s21] sm:$0xf]  ;;  %s2813_s10 = sshll.u32 %s3835_s20, 3 }
  0x21   : > { %v3854_v16 = vrot.slane %v366_v15, %v3843_v11  ;;  %v3858_v17 = vrot.slane %v366_v15, %v406_v13  ;;  %s3866_s22 = scalar_lea.vmem %s5096_s0, %s2938_s26  ;;  %v3901_v42 = vrot.slane %v366_v15, %v410_v33  ;;  %v3903_v43 = vrot.slane %v366_v15, %v414_v34  ;;  %v3185_v33 = vld [vmem:[%s5099_s3 + $0xe8] sm:$0xff]   ;;  %s4203_s14 = scalar_lea.vmem %s5104_s8, %s2813_s10 }
  0x22   : > { %3079 = vmatpush3.bf16.msra.mxu1 %v3164_v5  ;;  %2946 = vmatpush3.bf16.msra.mxu0 %v3164_v5  ;;  %v383_v26 = vld [vmem:[%s3866_s22 + $0x80] sm:$0xff]  ;;  %v385_v27 = vld [vmem:[%s3866_s22 + $0x90] sm:$0xff]  ;;  %v368_v34 = vld [vmem:[%s3866_s22 + $0x8] sm:$0xff] }
  0x23   : > { %3072 = vmatprep.subr.bf16.mxu1 %v3165_v6  ;;  %2947 = vmatprep.subr.bf16.mxu0 %v3165_v6  ;;  %v420_v19 = vpack.c.bf16 %v3854_v16, %v3854_v16  ;;  %v421_v20 = vpack.c.bf16 %v3858_v17, %v3858_v17  ;;  %v387_v30 = vld [vmem:[%s3866_s22 + $0xa0] sm:$0xff]  ;;  %v389_v31 = vld [vmem:[%s3866_s22 + $0xb0] sm:$0xff]  ;;  %v422_v54 = vpack.c.bf16 %v3901_v42, %v3901_v42 }
  0x24   : > { %v391_v48 = vld [vmem:[%s3866_s22 + $0xc0] sm:$0xff]  ;;  %v393_v49 = vld [vmem:[%s3866_s22 + $0xd0] sm:$0xff]  ;;  %v423_v55 = vpack.c.bf16 %v3903_v43, %v3903_v43 }
  0x25   : > { %v425_v23 = vpack.i.b16 %v420_v19, %v420_v19  ;;  %v432_v24 = vpack.i.b16 %v421_v20, %v421_v20  ;;  %v367_v50 = vld [vmem:[%s3866_s22] sm:$0xff]  ;;  %v369_v51 = vld [vmem:[%s3866_s22 + $0x10] sm:$0xff]  ;;  %v439_v4 = vpack.i.b16 %v422_v54, %v422_v54  ;;  %v3182_v20 = vld [vmem:[%s5099_s3 + $0x98] sm:$0xff]  }
  0x26   : > { %3080 = vmatpush3.bf16.msra.mxu1 %v3166_v8  ;;  %2948 = vmatpush3.bf16.msra.mxu0 %v3166_v8  ;;  %v371_v62 = vld [vmem:[%s3866_s22 + $0x20] sm:$0xff]  ;;  %v373_v63 = vld [vmem:[%s3866_s22 + $0x30] sm:$0xff]  ;;  %v446_v5 = vpack.i.b16 %v423_v55, %v423_v55 }
  0x27   : > { %3073 = vmatprep.subr.bf16.mxu1 %v3167_v9  ;;  %2949 = vmatprep.subr.bf16.mxu0 %v3167_v9  ;;  %v430_v28 = vrot.slane %v425_v23, %v3843_v11  ;;  %v437_v29 = vrot.slane %v432_v24, %v3843_v11  ;;  %v375_v2 = vld [vmem:[%s3866_s22 + $0x40] sm:$0xff]  ;;  %v377_v6 = vld [vmem:[%s3866_s22 + $0x50] sm:$0xff] }
  0x28   : > { %v397_v15 = vld [vmem:[%s3866_s22 + $0xf0] sm:$0xff]  ;;  %v451_v23 = vrot.slane %v446_v5, %v3843_v11 }
  0x29   : > { %v3887_v32 = vcombine.low %v430_v28, %v437_v29  ;;  %v381_v28 = vld [vmem:[%s3866_s22 + $0x70] sm:$0xff] }
  0x2a   : > { %3081 = vmatpush3.bf16.msra.mxu1 %v3168_v12  ;;  %2950 = vmatpush3.bf16.msra.mxu0 %v3168_v12  ;;  %v3181_v12 = vld [vmem:[%s5099_s3 + $0xd8] sm:$0xff]  }
  0x2b   : > { %3074 = vmatprep.subr.bf16.mxu1 %v3169_v14  ;;  %2951 = vmatprep.subr.bf16.mxu0 %v3169_v14  ;;  %v480_v36 = vmul.bf16 %v3887_v32, %v383_v26  ;;  %v482_v37 = vmul.bf16 %v3887_v32, %v385_v27  ;;  %v484_v38 = vmul.bf16 %v3887_v32, %v387_v30  ;;  %v395_v14 = vld [vmem:[%s3866_s22 + $0xe0] sm:$0xff] }
  0x2c   : > { %v486_v39 = vmul.bf16 %v3887_v32, %v389_v31  ;;  %v464_v52 = vmul.bf16 %v3887_v32, %v367_v50  ;;  %v466_v53 = vmul.bf16 %v3887_v32, %v369_v51  ;;  %v488_v57 = vmul.bf16 %v3887_v32, %v391_v48  ;;  %v379_v27 = vld [vmem:[%s3866_s22 + $0x60] sm:$0xff]  ;;  %v372_v50 = vld [vmem:[%s3866_s22 + $0x28] sm:$0xff]  ;;  %v374_v51 = vld [vmem:[%s3866_s22 + $0x38] sm:$0xff] }
  0x2d   : > { %v2834_v41 = vcombine.high %v480_v36, %v482_v37  ;;  %v2833_v44 = vcombine.low %v480_v36, %v482_v37  ;;  %v490_v58 = vmul.bf16 %v3887_v32, %v393_v49  ;;  %v468_v0 = vmul.bf16 %v3887_v32, %v371_v62  ;;  %v3184_v30 = vld [vmem:[%s5099_s3 + $0xa0] sm:$0xff]   ;;  %v3189_v49 = vld [vmem:[%s5099_s3 + $0xf8] sm:$0xff]  }
  0x2e   : > { %3082 = vmatpush3.bf16.msra.mxu1 %v3170_v18  ;;  %2952 = vmatpush3.bf16.msra.mxu0 %v3170_v18  ;;  %v2838_v47 = vcombine.high %v484_v38, %v486_v39  ;;  %v2818_v60 = vcombine.high %v464_v52, %v466_v53  ;;  %v2817_v61 = vcombine.low %v464_v52, %v466_v53  ;;  %v3190_v53 = vld [vmem:[%s5099_s3 + $0xb8] sm:$0xff]  }
  0x2f   : > { %3075 = vmatprep.subr.bf16.mxu1 %v3171_v21  ;;  %2953 = vmatprep.subr.bf16.mxu0 %v3171_v21  ;;  %v470_v1 = vmul.bf16 %v3887_v32, %v373_v63  ;;  %v2837_v3 = vcombine.low %v484_v38, %v486_v39  ;;  %v2842_v8 = vcombine.high %v488_v57, %v490_v58  ;;  %v3183_v21 = vld [vmem:[%s5099_s3 + $0xe0] sm:$0xff]  }
  0x30   : > { %983 = vmatprep.mubr.bf16.mxu1 %v2834_v41  ;;  %951 = vmatprep.mubr.bf16.mxu0 %v2818_v60  ;;  %v472_v18 = vmul.bf16 %v3887_v32, %v375_v2  ;;  %v474_v19 = vmul.bf16 %v3887_v32, %v377_v6  ;;  %v492_v24 = vmul.bf16 %v3887_v32, %v395_v14  ;;  %v3187_v41 = vld [vmem:[%s5099_s3 + $0xf0] sm:$0xff]   ;;  %v378_v60 = vld [vmem:[%s3866_s22 + $0x58] sm:$0xff] }
  0x31   : > { %v2822_v9 = vcombine.high %v468_v0, %v470_v1  ;;  %v2821_v26 = vcombine.low %v468_v0, %v470_v1  ;;  %v2841_v31 = vcombine.low %v488_v57, %v490_v58  ;;  %v476_v38 = vmul.bf16 %v3887_v32, %v379_v27  ;;  %v380_v1 = vld [vmem:[%s3866_s22 + $0x68] sm:$0xff]  ;;  %v382_v2 = vld [vmem:[%s3866_s22 + $0x78] sm:$0xff] }
  0x32   : > { %3083 = vmatpush3.bf16.msra.mxu1 %v3172_v22  ;;  %2954 = vmatpush3.bf16.msra.mxu0 %v3172_v22  ;;  %v444_v22 = vrot.slane %v439_v4, %v3843_v11  ;;  %v2826_v29 = vcombine.high %v472_v18, %v474_v19  ;;  %v478_v39 = vmul.bf16 %v3887_v32, %v381_v28 }
  0x33   : > { %3076 = vmatprep.subr.bf16.mxu1 %v3173_v25  ;;  %2955 = vmatprep.subr.bf16.mxu0 %v3173_v25  ;;  %v494_v25 = vmul.bf16 %v3887_v32, %v397_v15  ;;  %v3188_v32 = vld [vmem:[%s5099_s3 + $0xb0] sm:$0xff]  }
  0x34   : > { %v3965_v37 = vcombine.low %v444_v22, %v451_v23 }
  0x35   : > { %v2846_v36 = vcombine.high %v492_v24, %v494_v25  ;;  %v2845_v48 = vcombine.low %v492_v24, %v494_v25  ;;  %v392_v24 = vld [vmem:[%s3866_s22 + $0xc8] sm:$0xff]  ;;  %v394_v25 = vld [vmem:[%s3866_s22 + $0xd8] sm:$0xff] }
  0x36   : > { %3084 = vmatpush3.bf16.msra.mxu1 %v3174_v35  ;;  %2956 = vmatpush3.bf16.msra.mxu0 %v3174_v35  ;;  %v370_v35 = vld [vmem:[%s3866_s22 + $0x18] sm:$0xff]  ;;  %v469_v54 = vmul.bf16 %v3965_v37, %v372_v50  ;;  %v471_v55 = vmul.bf16 %v3965_v37, %v374_v51  ;;  %v475_v62 = vmul.bf16 %v3965_v37, %v378_v60  ;;  %v3211_v51 = vld [vmem:[%s5101_s5 + $0x64] ss:$8 sps:$4 sm:$0xff]  }
  0x37   : > { %3005 = vmatprep.subr.bf16.mxu1 %v3175_v40  ;;  %v3186_v40 = vld [vmem:[%s5099_s3 + $0xa8] sm:$0xff]   ;;  %v479_v4 = vmul.bf16 %v3965_v37, %v382_v2  ;;  %v491_v27 = vmul.bf16 %v3965_v37, %v394_v25  ;;  %v3206_v50 = vld [vmem:[%s5101_s5 + $0x50] ss:$8 sps:$4 sm:$0xff]  }
  0x38   : > { %v2824_v58 = vcombine.high %v469_v54, %v471_v55  ;;  %v2823_v63 = vcombine.low %v469_v54, %v471_v55  ;;  %v3212_v54 = vld [vmem:[%s5101_s5 + $0x70] ss:$8 sps:$4 sm:$0xff]   ;;  %v3679_v55 = vmov 0  }
  0x39   : > { %984 = vmatmul.mubr.bf16.vlgmr.msra.gmra.mrb[0].mxu1 %v2833_v44  ;;  %952 = vmatmul.mubr.bf16.vlgmr.msra.gmra.mrb[0].mxu0 %v2817_v61  ;;  %v465_v44 = vmul.bf16 %v3965_v37, %v368_v34 }
  0x3a   : > { %3006 = vmatpush3.bf16.msra.mxu1 %v3176_v45  ;;  %991 = vmatprep.mubr.bf16.mxu1 %v2838_v47  ;;  %v467_v45 = vmul.bf16 %v3965_v37, %v370_v35  ;;  %v2830_v47 = vcombine.high %v476_v38, %v478_v39 }
  0x3b   : > { %3007 = vmatprep.subr.bf16.mxu1 %v3177_v46  ;;  %959 = vmatprep.mubr.bf16.mxu0 %v2822_v9  ;;  %v2825_v46 = vcombine.low %v472_v18, %v474_v19  ;;  %v388_v18 = vld [vmem:[%s3866_s22 + $0xa8] sm:$0xff]  ;;  %v390_v19 = vld [vmem:[%s3866_s22 + $0xb8] sm:$0xff] }
  0x3c   : > { %v2820_v52 = vcombine.high %v465_v44, %v467_v45  ;;  %v2819_v57 = vcombine.low %v465_v44, %v467_v45  ;;  %v3199_v44 = vld [vmem:[%s5101_s5 + $0x24] ss:$8 sps:$4 sm:$0xff]   ;;  %v3197_v45 = vld [vmem:[%s5101_s5 + $0x20] ss:$8 sps:$4 sm:$0xff]  }
  0x3e   : > { %3008 = vmatpush3.bf16.msra.mxu1 %v3178_v56  ;;  %v2829_v56 = vcombine.low %v476_v38, %v478_v39  ;;  %v3193_v39 = vld [vmem:[%s5101_s5 + $0x4] ss:$8 sps:$4 sm:$0xff]  }
  0x3f   : > { %3009 = vmatprep.subr.bf16.mxu1 %v3179_v59  ;;  %v376_v59 = vld [vmem:[%s3866_s22 + $0x48] sm:$0xff]  ;;  %1245 = vmatprep.subr.bf16.mxu0 %v3193_v39 }
  0x40   : > { %v473_v61 = vmul.bf16 %v3965_v37, %v376_v59 }
  0x41   : > { %992 = vmatmul.mubr.bf16.gmra.mrb[4].mxu1 %v2837_v3  ;;  %960 = vmatmul.mubr.bf16.gmra.mrb[4].mxu0 %v2821_v26  ;;  %v477_v3 = vmul.bf16 %v3965_v37, %v380_v1  ;;  %v489_v26 = vmul.bf16 %v3965_v37, %v392_v24 }
  0x42   : > { %3010 = vmatpush3.bf16.msra.mxu1 %v3180_v7  ;;  %999 = vmatprep.mubr.bf16.mxu1 %v2842_v8  ;;  %v2828_v0 = vcombine.high %v473_v61, %v475_v62  ;;  %v2827_v5 = vcombine.low %v473_v61, %v475_v62  ;;  %v384_v7 = vld [vmem:[%s3866_s22 + $0x88] sm:$0xff]  ;;  %v386_v8 = vld [vmem:[%s3866_s22 + $0x98] sm:$0xff] }
  0x43   : > { %3011 = vmatprep.subr.bf16.mxu1 %v3181_v12  ;;  %967 = vmatprep.mubr.bf16.mxu0 %v2826_v29  ;;  %v2832_v6 = vcombine.high %v477_v3, %v479_v4  ;;  %v481_v9 = vmul.bf16 %v3965_v37, %v384_v7  ;;  %v483_v12 = vmul.bf16 %v3965_v37, %v386_v8 }
  0x44   : > { %v2831_v14 = vcombine.low %v477_v3, %v479_v4  ;;  %v2844_v29 = vcombine.high %v489_v26, %v491_v27  ;;  %v2843_v35 = vcombine.low %v489_v26, %v491_v27 }
  0x45   : > { %v2836_v15 = vcombine.high %v481_v9, %v483_v12  ;;  %v2835_v22 = vcombine.low %v481_v9, %v483_v12 }
  0x46   : > { %3012 = vmatpush3.bf16.msra.mxu1 %v3182_v20  ;;  %v485_v20 = vmul.bf16 %v3965_v37, %v388_v18 }
  0x47   : > { %3013 = vmatprep.subr.bf16.mxu1 %v3183_v21  ;;  %v487_v21 = vmul.bf16 %v3965_v37, %v390_v19 }
  0x49   : > { %1000 = vmatmul.mubr.bf16.gmra.mrb[8].mxu1 %v2841_v31  ;;  %968 = vmatmul.mubr.bf16.gmra.mrb[8].mxu0 %v2825_v46  ;;  %v2840_v23 = vcombine.high %v485_v20, %v487_v21  ;;  %v2839_v28 = vcombine.low %v485_v20, %v487_v21  ;;  %v398_v31 = vld [vmem:[%s3866_s22 + $0xf8] sm:$0xff] }
  0x4a   : > { %3014 = vmatpush3.bf16.msra.mxu1 %v3184_v30  ;;  %1007 = vmatprep.mubr.bf16.mxu1 %v2846_v36  ;;  %v396_v30 = vld [vmem:[%s3866_s22 + $0xe8] sm:$0xff]  ;;  %v495_v34 = vmul.bf16 %v3965_v37, %v398_v31  ;;  %v3202_v46 = vld [vmem:[%s5101_s5 + $0x34] ss:$8 sps:$4 sm:$0xff]  }
  0x4b   : > { %3015 = vmatprep.subr.bf16.mxu1 %v3185_v33  ;;  %975 = vmatprep.mubr.bf16.mxu0 %v2830_v47  ;;  %v493_v33 = vmul.bf16 %v3965_v37, %v396_v30  ;;  %v3196_v37 = vld [vmem:[%s5101_s5 + $0x14] ss:$8 sps:$4 sm:$0xff]   ;;  %v3200_v47 = vld [vmem:[%s5101_s5 + $0x30] ss:$8 sps:$4 sm:$0xff]  }
  0x4d   : > { %v2848_v36 = vcombine.high %v493_v33, %v495_v34  ;;  %v2847_v38 = vcombine.low %v493_v33, %v495_v34 }
  0x4e   : > { %3016 = vmatpush3.bf16.msra.mxu1 %v3186_v40  ;;  %v3191_v40 = vld [vmem:[%s5101_s5] ss:$8 sps:$4 sm:$0xff]  }
  0x4f   : > { %3017 = vmatprep.subr.bf16.mxu1 %v3187_v41  ;;  %1246 = vmatpush1.bf16.msra.mxu0 %v3191_v40  ;;  %v3194_v41 = vld [vmem:[%s5101_s5 + $0x10] ss:$8 sps:$4 sm:$0xff]  }
  0x50   : > { %1247 = vmatprep.subr.bf16.mxu0 %v3196_v37 }
  0x51   : > { %1008 = vmatmul.mubr.bf16.gmra.mrb[12].mxu1 %v2845_v48  ;;  %976 = vmatmul.mubr.bf16.gmra.mrb[12].mxu0 %v2829_v56  ;;  %v3203_v48 = vld [vmem:[%s5101_s5 + $0x40] ss:$8 sps:$4 sm:$0xff]  }
  0x52   : > { %3018 = vmatpush3.bf16.msra.mxu1 %v3188_v32  ;;  %1048 = vmatprep.mubr.bf16.mxu1 %v2820_v52  ;;  %v3205_v32 = vld [vmem:[%s5101_s5 + $0x44] ss:$8 sps:$4 sm:$0xff]   ;;  %v3209_v52 = vld [vmem:[%s5101_s5 + $0x60] ss:$8 sps:$4 sm:$0xff]  }
  0x53   : > { %3019 = vmatprep.subr.bf16.mxu1 %v3189_v49  ;;  %1248 = vmatpush1.bf16.msra.mxu0 %v3194_v41  ;;  %v3208_v49 = vld [vmem:[%s5101_s5 + $0x54] ss:$8 sps:$4 sm:$0xff]  }
  0x54   : > { %1249 = vmatprep.subr.bf16.mxu0 %v3199_v44  ;;  %1277 = vmatprep.mubr.bf16.mxu0 %v3679_v55  ;;  %v4083_v44 = vld [vmem:[%s5100_s4] ss:$0 sm:$0xff] }
  0x56   : > { %3020 = vmatpush3.bf16.msra.mxu1 %v3190_v53  ;;  %v3214_v53 = vld [vmem:[%s5101_s5 + $0x74] ss:$8 sps:$4 sm:$0xff]  }
  0x57   : > { %1250 = vmatpush1.bf16.msra.mxu0 %v3197_v45 }
  0x58   : > { %1251 = vmatprep.subr.bf16.mxu0 %v3202_v46 }
  0x59   : > { %1049 = vmatmul.mubr.bf16.vlgmr.msra.gmra.mrb[16].mxu1 %v2819_v57 }
  0x5a   : > { %1056 = vmatprep.mubr.bf16.mxu1 %v2824_v58 }
  0x5b   : > { %1252 = vmatpush1.bf16.msra.mxu0 %v3200_v47 }
  0x5c   : > { %1253 = vmatprep.subr.bf16.mxu0 %v3205_v32 }
  0x5f   : > { %1254 = vmatpush1.bf16.msra.mxu0 %v3203_v48 }
  0x60   : > { %1255 = vmatprep.subr.bf16.mxu0 %v3208_v49 }
  0x61   : > { %1057 = vmatmul.mubr.bf16.gmra.mrb[20].mxu1 %v2823_v63 }
  0x62   : > { %1064 = vmatprep.mubr.bf16.mxu1 %v2828_v0 }
  0x63   : > { %1256 = vmatpush1.bf16.msra.mxu0 %v3206_v50 }
  0x64   : > { %1257 = vmatprep.subr.bf16.mxu0 %v3211_v51 }
  0x67   : > { %1258 = vmatpush1.bf16.msra.mxu0 %v3209_v52 }
  0x68   : > { %1259 = vmatprep.subr.bf16.mxu0 %v3214_v53 }
  0x69   : > { %1065 = vmatmul.mubr.bf16.gmra.mrb[24].mxu1 %v2827_v5 }
  0x6a   : > { %1072 = vmatprep.mubr.bf16.mxu1 %v2832_v6 }
  0x6b   : > { %1260 = vmatpush1.bf16.msra.mxu0 %v3212_v54 }
  0x71   : > { %1073 = vmatmul.mubr.bf16.gmra.mrb[28].mxu1 %v2831_v14 }
  0x72   : > { %1080 = vmatprep.mubr.bf16.mxu1 %v2836_v15 }
  0x79   : > { %1081 = vmatmul.mubr.bf16.gmra.mrb[32].mxu1 %v2835_v22 }
  0x7a   : > { %1088 = vmatprep.mubr.bf16.mxu1 %v2840_v23 }
  0x81   : > { %1089 = vmatmul.mubr.bf16.gmra.mrb[36].mxu1 %v2839_v28 }
  0x82   : > { %1096 = vmatprep.mubr.bf16.mxu1 %v2844_v29 }
  0x89   : > { %1097 = vmatmul.mubr.bf16.gmra.mrb[40].mxu1 %v2843_v35 }
  0x8a   : > { %1104 = vmatprep.mubr.bf16.mxu1 %v2848_v36 }
  0x91   : > { %1105 = vmatmul.mubr.bf16.gmra.mrb[44].mxu1 %v2847_v38 }
  0x92   : > { %1734 = vmatprep.mubr.bf16.mxu1 %v3679_v55 }
 0x10c   : > { %v2981_v56 = vpop.f32.mrb[0].mxu1  ;;  %v2957_v62 = vpop.f32.mrb[0].mxu0 }
 0x10d   : > { %v2982_v57 = vpop.f32.mrb[1].mxu1  ;;  %v2958_v63 = vpop.f32.mrb[1].mxu0 }
 0x10e   : > { %v4064_v58 = vadd.f32 %v2982_v57, %v2981_v56  ;;  %v2984_v59 = vpop.f32.mrb[2].mxu1  ;;  %v2959_v0 = vadd.f32 %v2958_v63, %v2957_v62  ;;  %v2960_v1 = vpop.f32.mrb[2].mxu0 }
 0x10f   : > { %v2985_v60 = vpop.f32.mrb[3].mxu1  ;;  %v2961_v3 = vpop.f32.mrb[3].mxu0 }
 0x110   : > { %v4066_v61 = vadd.f32 %v2985_v60, %v2984_v59  ;;  %v2962_v5 = vadd.f32 %v2961_v3, %v2960_v1  ;;  %v954_v47 = vadd.f32 %v2959_v0, %v4083_v44 }
 0x112   : > { %v957_v54 = vadd.f32 %v2962_v5, %v4083_v44 }
 0x114   : > { %v2987_v2 = vpop.f32.mrb[4].mxu1  ;;  %v2963_v12 = vpop.f32.mrb[4].mxu0 }
 0x115   : > { %v2988_v4 = vpop.f32.mrb[5].mxu1  ;;  %v2964_v14 = vpop.f32.mrb[5].mxu0 }
 0x116   : > { %v4068_v6 = vadd.f32 %v2988_v4, %v2987_v2  ;;  %v2990_v7 = vpop.f32.mrb[6].mxu1  ;;  %v2965_v15 = vadd.f32 %v2964_v14, %v2963_v12  ;;  %v2966_v18 = vpop.f32.mrb[6].mxu0 }
 0x117   : > { %v2991_v8 = vpop.f32.mrb[7].mxu1  ;;  %v2967_v20 = vpop.f32.mrb[7].mxu0 }
 0x118   : > { %v4070_v9 = vadd.f32 %v2991_v8, %v2990_v7  ;;  %v2968_v22 = vadd.f32 %v2967_v20, %v2966_v18  ;;  %v962_v60 = vadd.f32 %v2965_v15, %v4083_v44 }
 0x11a   : > { %v965_v3 = vadd.f32 %v2968_v22, %v4083_v44 }
 0x11c   : > { %v2993_v19 = vpop.f32.mrb[8].mxu1  ;;  %v2969_v27 = vpop.f32.mrb[8].mxu0 }
 0x11d   : > { %v2994_v21 = vpop.f32.mrb[9].mxu1  ;;  %v2970_v28 = vpop.f32.mrb[9].mxu0 }
 0x11e   : > { %v4072_v23 = vadd.f32 %v2994_v21, %v2993_v19  ;;  %v2996_v24 = vpop.f32.mrb[10].mxu1  ;;  %v2971_v29 = vadd.f32 %v2970_v28, %v2969_v27  ;;  %v2972_v30 = vpop.f32.mrb[10].mxu0 }
 0x11f   : > { %v2997_v25 = vpop.f32.mrb[11].mxu1  ;;  %v2973_v33 = vpop.f32.mrb[11].mxu0 }
 0x120   : > { %v4074_v26 = vadd.f32 %v2997_v25, %v2996_v24  ;;  %v2974_v35 = vadd.f32 %v2973_v33, %v2972_v30  ;;  %v970_v5 = vadd.f32 %v2971_v29, %v4083_v44 }
 0x122   : > { %v973_v15 = vadd.f32 %v2974_v35, %v4083_v44 }
 0x124   : > { %v2999_v31 = vpop.f32.mrb[12].mxu1  ;;  %v2975_v37 = vpop.f32.mrb[12].mxu0 }
 0x125   : > { %v3000_v34 = vpop.f32.mrb[13].mxu1  ;;  %v2976_v41 = vpop.f32.mrb[13].mxu0 }
 0x126   : > { %v4076_v36 = vadd.f32 %v3000_v34, %v2999_v31  ;;  %v3002_v38 = vpop.f32.mrb[14].mxu1  ;;  %v2977_v45 = vadd.f32 %v2976_v41, %v2975_v37  ;;  %v2978_v46 = vpop.f32.mrb[14].mxu0 }
 0x127   : > { %v3003_v39 = vpop.f32.mrb[15].mxu1  ;;  %v2979_v48 = vpop.f32.mrb[15].mxu0 }
 0x128   : > { %v4078_v40 = vadd.f32 %v3003_v39, %v3002_v38  ;;  %v2980_v50 = vadd.f32 %v2979_v48, %v2978_v46  ;;  %v978_v29 = vadd.f32 %v2977_v45, %v4083_v44 }
 0x12a   : > { %v981_v35 = vadd.f32 %v2980_v50, %v4083_v44 }
 0x12c   : > { %v3021_v32 = vpop.f32.mrb[16].mxu1 }
 0x12d   : > { %v3022_v49 = vpop.f32.mrb[17].mxu1 }
 0x12e   : > { %v3023_v51 = vadd.f32 %v3022_v49, %v3021_v32  ;;  %v3024_v52 = vpop.f32.mrb[18].mxu1 }
 0x12f   : > { %v3025_v53 = vpop.f32.mrb[19].mxu1 }
 0x130   : > { %v1051_v56 = vadd.f32 %v3023_v51, %v954_v47  ;;  %v3026_v57 = vadd.f32 %v3025_v53, %v3024_v52  ;;  %v986_v52 = vadd.f32 %v4064_v58, %v4083_v44  ;;  %v994_v58 = vadd.f32 %v4068_v6, %v4083_v44 }
 0x131   : > { %v1002_v6 = vadd.f32 %v4072_v23, %v4083_v44  ;;  %v1010_v23 = vadd.f32 %v4076_v36, %v4083_v44 }
 0x132   : > { %v1054_v59 = vadd.f32 %v3026_v57, %v957_v54  ;;  %3263 = vtanh.f32 %v1051_v56  ;;  %v989_v57 = vadd.f32 %v4066_v61, %v4083_v44  ;;  %v997_v61 = vadd.f32 %v4070_v9, %v4083_v44 }
 0x133   : > { %v1005_v9 = vadd.f32 %v4074_v26, %v4083_v44  ;;  %v1013_v26 = vadd.f32 %v4078_v40, %v4083_v44  ;;  %v3215_v40 = vld [vmem:[%s5098_s2] ss:$16 sps:$4 sm:$0xff]   ;;  %v3217_v44 = vld [vmem:[%s5098_s2 + $0x4] ss:$16 sps:$4 sm:$0xff]  }
 0x134   : > { %3265 = vtanh.f32 %v1054_v59  ;;  %v3027_v62 = vpop.f32.mrb[20].mxu1  ;;  %1702 = vmatprep.subr.bf16.mxu1 %v3217_v44 }
 0x135   : > { %v3028_v63 = vpop.f32.mrb[21].mxu1  ;;  %1703 = vmatpush1.bf16.msra.mxu1 %v3215_v40 }
 0x136   : > { %v3029_v1 = vadd.f32 %v3028_v63, %v3027_v62  ;;  %v3030_v0 = vpop.f32.mrb[22].mxu1 }
 0x137   : > { %v3031_v2 = vpop.f32.mrb[23].mxu1 }
 0x138   : > { %v1059_v4 = vadd.f32 %v3029_v1, %v962_v60  ;;  %v3032_v7 = vadd.f32 %v3031_v2, %v3030_v0 }
 0x13a   : > { %v1062_v8 = vadd.f32 %v3032_v7, %v965_v3  ;;  %3267 = vtanh.f32 %v1059_v4 }
 0x13c   : > { %3269 = vtanh.f32 %v1062_v8  ;;  %v3033_v12 = vpop.f32.mrb[24].mxu1  ;;  %v3264_v14 = vpop.eup %3263 }
 0x13d   : > { %v3034_v18 = vpop.f32.mrb[25].mxu1 }
 0x13e   : > { %v3266_v19 = vpop.eup %3265  ;;  %v3035_v20 = vadd.f32 %v3034_v18, %v3033_v12  ;;  %v3036_v21 = vpop.f32.mrb[26].mxu1 }
 0x13f   : > { %v3037_v24 = vpop.f32.mrb[27].mxu1  ;;  %v1129_v25 = vpack.c.bf16 %v3266_v19, %v3264_v14 }
 0x140   : > { %v1067_v27 = vadd.f32 %v3035_v20, %v970_v5  ;;  %v3038_v28 = vadd.f32 %v3037_v24, %v3036_v21 }
 0x141   : > { %1278 = vmatmul.mubr.bf16.vlgmr.msra.gmra.mrb[16].mxu0 %v1129_v25 }
 0x142   : > { %3271 = vtanh.f32 %v1067_v27  ;;  %v1070_v22 = vadd.f32 %v3038_v28, %v973_v15  ;;  %1287 = vmatprep.mubr.bf16.mxu0 %v3679_v55 }
 0x144   : > { %3273 = vtanh.f32 %v1070_v22  ;;  %v3039_v30 = vpop.f32.mrb[28].mxu1  ;;  %v3268_v31 = vpop.eup %3267 }
 0x145   : > { %v3040_v33 = vpop.f32.mrb[29].mxu1 }
 0x146   : > { %v3270_v34 = vpop.eup %3269  ;;  %v3041_v38 = vadd.f32 %v3040_v33, %v3039_v30  ;;  %v3042_v39 = vpop.f32.mrb[30].mxu1 }
 0x147   : > { %v3043_v37 = vpop.f32.mrb[31].mxu1  ;;  %v1130_v41 = vpack.c.bf16 %v3270_v34, %v3268_v31 }
 0x148   : > { %v1075_v46 = vadd.f32 %v3041_v38, %v978_v29  ;;  %v3044_v47 = vadd.f32 %v3043_v37, %v3042_v39 }
 0x149   : > { %1288 = vmatmul.mubr.bf16.gmra.mrb[20].mxu0 %v1130_v41 }
 0x14a   : > { %3275 = vtanh.f32 %v1075_v46  ;;  %v1078_v32 = vadd.f32 %v3044_v47, %v981_v35  ;;  %1297 = vmatprep.mubr.bf16.mxu0 %v3679_v55 }
 0x14c   : > { %v3272_v48 = vpop.eup %3271  ;;  %3277 = vtanh.f32 %v1078_v32  ;;  %v3045_v45 = vpop.f32.mrb[32].mxu1 }
 0x14d   : > { %v3046_v49 = vpop.f32.mrb[33].mxu1 }
 0x14e   : > { %v3274_v51 = vpop.eup %3273  ;;  %v3047_v50 = vadd.f32 %v3046_v49, %v3045_v45  ;;  %v3048_v53 = vpop.f32.mrb[34].mxu1 }
 0x14f   : > { %v3049_v54 = vpop.f32.mrb[35].mxu1  ;;  %v1131_v56 = vpack.c.bf16 %v3274_v51, %v3272_v48 }
 0x150   : > { %v1083_v59 = vadd.f32 %v3047_v50, %v986_v52  ;;  %v3050_v60 = vadd.f32 %v3049_v54, %v3048_v53  ;;  %v3218_v52 = vld [vmem:[%s5098_s2 + $0x8] ss:$16 sps:$4 sm:$0xff]   ;;  %v3220_v50 = vld [vmem:[%s5098_s2 + $0xc] ss:$16 sps:$4 sm:$0xff]   ;;  %v3223_v53 = vld [vmem:[%s5098_s2 + $0x24] ss:$16 sps:$4 sm:$0xff]  }
 0x151   : > { %1298 = vmatmul.mubr.bf16.gmra.mrb[24].mxu0 %v1131_v56  ;;  %v3226_v54 = vld [vmem:[%s5098_s2 + $0x2c] ss:$16 sps:$4 sm:$0xff]   ;;  %1815 = vmatprep.subr.bf16.mxu0 %v3220_v50  ;;  %v3221_v56 = vld [vmem:[%s5098_s2 + $0x20] ss:$16 sps:$4 sm:$0xff]  }
 0x152   : > { %v1086_v62 = vadd.f32 %v3050_v60, %v989_v57  ;;  %1307 = vmatprep.mubr.bf16.mxu0 %v3679_v55  ;;  %3279 = vtanh.f32 %v1083_v59  ;;  %1816 = vmatpush1.bf16.msra.mxu0 %v3218_v52  ;;  %v3224_v57 = vld [vmem:[%s5098_s2 + $0x28] ss:$16 sps:$4 sm:$0xff]   ;;  %v3229_v59 = vld [vmem:[%s5098_s2 + $0x44] ss:$16 sps:$4 sm:$0xff]   ;;  %v3232_v60 = vld [vmem:[%s5098_s2 + $0x4c] ss:$16 sps:$4 sm:$0xff]  }
 0x153   : > { %1704 = vmatprep.subr.bf16.mxu1 %v3223_v53  ;;  %1817 = vmatprep.subr.bf16.mxu0 %v3226_v54 }
 0x154   : > { %v3276_v63 = vpop.eup %3275  ;;  %3281 = vtanh.f32 %v1086_v62  ;;  %v3051_v1 = vpop.f32.mrb[36].mxu1  ;;  %1705 = vmatpush1.bf16.msra.mxu1 %v3221_v56  ;;  %v3227_v62 = vld [vmem:[%s5098_s2 + $0x40] ss:$16 sps:$4 sm:$0xff]  }
 0x155   : > { %v3052_v0 = vpop.f32.mrb[37].mxu1  ;;  %1706 = vmatprep.subr.bf16.mxu1 %v3229_v59 }
 0x156   : > { %v3278_v2 = vpop.eup %3277  ;;  %v3053_v3 = vadd.f32 %v3052_v0, %v3051_v1  ;;  %v3054_v4 = vpop.f32.mrb[38].mxu1  ;;  %1818 = vmatpush1.bf16.msra.mxu0 %v3224_v57  ;;  %v3235_v1 = vld [vmem:[%s5098_s2 + $0x64] ss:$16 sps:$4 sm:$0xff]   ;;  %v3238_v0 = vld [vmem:[%s5098_s2 + $0x6c] ss:$16 sps:$4 sm:$0xff]  }
 0x157   : > { %v3055_v7 = vpop.f32.mrb[39].mxu1  ;;  %v1132_v8 = vpack.c.bf16 %v3278_v2, %v3276_v63  ;;  %v3230_v63 = vld [vmem:[%s5098_s2 + $0x48] ss:$16 sps:$4 sm:$0xff]   ;;  %1819 = vmatprep.subr.bf16.mxu0 %v3232_v60  ;;  %v3233_v2 = vld [vmem:[%s5098_s2 + $0x60] ss:$16 sps:$4 sm:$0xff]  }
 0x158   : > { %v1091_v5 = vadd.f32 %v3053_v3, %v994_v58  ;;  %v3056_v12 = vadd.f32 %v3055_v7, %v3054_v4  ;;  %1707 = vmatpush1.bf16.msra.mxu1 %v3227_v62  ;;  %v3236_v58 = vld [vmem:[%s5098_s2 + $0x68] ss:$16 sps:$4 sm:$0xff]   ;;  %v3241_v3 = vld [vmem:[%s5098_s2 + $0x84] ss:$16 sps:$4 sm:$0xff]   ;;  %v3244_v4 = vld [vmem:[%s5098_s2 + $0x8c] ss:$16 sps:$4 sm:$0xff]  }
 0x159   : > { %1308 = vmatmul.mubr.bf16.gmra.mrb[28].mxu0 %v1132_v8  ;;  %1708 = vmatprep.subr.bf16.mxu1 %v3235_v1  ;;  %v3239_v7 = vld [vmem:[%s5098_s2 + $0x80] ss:$16 sps:$4 sm:$0xff]   ;;  %v3242_v8 = vld [vmem:[%s5098_s2 + $0x88] ss:$16 sps:$4 sm:$0xff]   ;;  %v3253_v60 = vld [vmem:[%s5098_s2 + $0xc4] ss:$16 sps:$4 sm:$0xff]  }
 0x15a   : > { %v1094_v14 = vadd.f32 %v3056_v12, %v997_v61  ;;  %1317 = vmatprep.mubr.bf16.mxu0 %v3679_v55  ;;  %3283 = vtanh.f32 %v1091_v5  ;;  %1820 = vmatpush1.bf16.msra.mxu0 %v3230_v63  ;;  %v3247_v61 = vld [vmem:[%s5098_s2 + $0xa4] ss:$16 sps:$4 sm:$0xff]   ;;  %v3250_v5 = vld [vmem:[%s5098_s2 + $0xac] ss:$16 sps:$4 sm:$0xff]   ;;  %v3245_v12 = vld [vmem:[%s5098_s2 + $0xa0] ss:$16 sps:$4 sm:$0xff]  }
 0x15b   : > { %1821 = vmatprep.subr.bf16.mxu0 %v3238_v0  ;;  %v3256_v62 = vld [vmem:[%s5098_s2 + $0xcc] ss:$16 sps:$4 sm:$0xff]   ;;  %v3251_v0 = vld [vmem:[%s5098_s2 + $0xc0] ss:$16 sps:$4 sm:$0xff]  }
 0x15c   : > { %3285 = vtanh.f32 %v1094_v14  ;;  %v3057_v18 = vpop.f32.mrb[40].mxu1  ;;  %v3280_v19 = vpop.eup %3279  ;;  %1709 = vmatpush1.bf16.msra.mxu1 %v3233_v2  ;;  %v3248_v14 = vld [vmem:[%s5098_s2 + $0xa8] ss:$16 sps:$4 sm:$0xff]  }
 0x15d   : > { %v3058_v15 = vpop.f32.mrb[41].mxu1  ;;  %1710 = vmatprep.subr.bf16.mxu1 %v3241_v3  ;;  %v3254_v2 = vld [vmem:[%s5098_s2 + $0xc8] ss:$16 sps:$4 sm:$0xff]  }
 0x15e   : > { %v3282_v20 = vpop.eup %3281  ;;  %v3059_v21 = vadd.f32 %v3058_v15, %v3057_v18  ;;  %v3060_v24 = vpop.f32.mrb[42].mxu1  ;;  %1822 = vmatpush1.bf16.msra.mxu0 %v3236_v58  ;;  %v1153_v18 = vld [vmem:[%s5102_s6] sm:$0x3] }
 0x15f   : > { %v3061_v25 = vpop.f32.mrb[43].mxu1  ;;  %v1133_v27 = vpack.c.bf16 %v3282_v20, %v3280_v19  ;;  %1823 = vmatprep.subr.bf16.mxu0 %v3244_v4  ;;  %v4193_v19 = vrot.slane %v1153_v18, %v3843_v11  ;;  %v4198_v15 = vrot.slane %v1153_v18, %v406_v13  ;;  %v3257_v18 = vld [vmem:[%s5098_s2 + $0xe0] ss:$16 sps:$4 sm:$0xff]  }
 0x160   : > { %v1099_v28 = vadd.f32 %v3059_v21, %v1002_v6  ;;  %v3062_v22 = vadd.f32 %v3061_v25, %v3060_v24  ;;  %1711 = vmatpush1.bf16.msra.mxu1 %v3239_v7 }
 0x161   : > { %1318 = vmatmul.mubr.bf16.gmra.mrb[32].mxu0 %v1133_v27  ;;  %1712 = vmatprep.subr.bf16.mxu1 %v3247_v61 }
 0x162   : > { %v1102_v29 = vadd.f32 %v3062_v22, %v1005_v9  ;;  %1327 = vmatprep.mubr.bf16.mxu0 %v3679_v55  ;;  %3287 = vtanh.f32 %v1099_v28  ;;  %1824 = vmatpush1.bf16.msra.mxu0 %v3242_v8 }
 0x163   : > { %1825 = vmatprep.subr.bf16.mxu0 %v3250_v5  ;;  %v3259_v5 = vld [vmem:[%s5098_s2 + $0xe4] ss:$16 sps:$4 sm:$0xff]  }
 0x164   : > { %3289 = vtanh.f32 %v1102_v29  ;;  %v3063_v30 = vpop.f32.mrb[44].mxu1  ;;  %v3284_v31 = vpop.eup %3283  ;;  %1713 = vmatpush1.bf16.msra.mxu1 %v3245_v12  ;;  %v3262_v12 = vld [vmem:[%s5098_s2 + $0xec] ss:$16 sps:$4 sm:$0xff]  }
 0x165   : > { %v3064_v33 = vpop.f32.mrb[45].mxu1  ;;  %1714 = vmatprep.subr.bf16.mxu1 %v3253_v60 }
 0x166   : > { %v3286_v34 = vpop.eup %3285  ;;  %v3065_v35 = vadd.f32 %v3064_v33, %v3063_v30  ;;  %v3066_v38 = vpop.f32.mrb[46].mxu1  ;;  %1826 = vmatpush1.bf16.msra.mxu0 %v3248_v14 }
 0x167   : > { %v3067_v39 = vpop.f32.mrb[47].mxu1  ;;  %v1134_v37 = vpack.c.bf16 %v3286_v34, %v3284_v31  ;;  %1827 = vmatprep.subr.bf16.mxu0 %v3256_v62 }
 0x168   : > { %v1107_v41 = vadd.f32 %v3065_v35, %v1010_v23  ;;  %v3068_v46 = vadd.f32 %v3067_v39, %v3066_v38  ;;  %1715 = vmatpush1.bf16.msra.mxu1 %v3251_v0 }
 0x169   : > { %1328 = vmatmul.mubr.bf16.gmra.mrb[36].mxu0 %v1134_v37  ;;  %1716 = vmatprep.subr.bf16.mxu1 %v3259_v5 }
 0x16a   : > { %v1110_v47 = vadd.f32 %v3068_v46, %v1013_v26  ;;  %1337 = vmatprep.mubr.bf16.mxu0 %v3679_v55  ;;  %3291 = vtanh.f32 %v1107_v41  ;;  %1828 = vmatpush1.bf16.msra.mxu0 %v3254_v2 }
 0x16b   : > { %1829 = vmatprep.subr.bf16.mxu0 %v3262_v12 }
 0x16c   : > { %3293 = vtanh.f32 %v1110_v47  ;;  %v3288_v32 = vpop.eup %3287  ;;  %1717 = vmatpush1.bf16.msra.mxu1 %v3257_v18 }
 0x16e   : > { %v3290_v48 = vpop.eup %3289 }
 0x16f   : > { %v1135_v45 = vpack.c.bf16 %v3290_v48, %v3288_v32 }
 0x171   : > { %1338 = vmatmul.mubr.bf16.gmra.mrb[40].mxu0 %v1135_v45 }
 0x172   : > { %1347 = vmatprep.mubr.bf16.mxu0 %v3679_v55 }
 0x174   : > { %v3292_v36 = vpop.eup %3291 }
 0x176   : > { %v3294_v49 = vpop.eup %3293 }
 0x177   : > { %v1136_v51 = vpack.c.bf16 %v3294_v49, %v3292_v36 }
 0x179   : > { %1348 = vmatmul.mubr.bf16.gmra.mrb[44].mxu0 %v1136_v51 }
 0x17a   : > { %1847 = vmatprep.mubr.bf16.mxu0 %v3679_v55 }
 0x214   : > { %v1279_v20 = vpop.f32.mrb[16].mxu0 }
 0x215   : > { %v4206_v6 = vadd.f32 %v1279_v20, %v4193_v19  ;;  %v1281_v21 = vpop.f32.mrb[17].mxu0  ;;  %v3260_v20 = vld [vmem:[%s5098_s2 + $0xe8] ss:$16 sps:$4 sm:$0xff]  }
 0x216   : > { %v1282_v11 = vadd.f32 %v1281_v21, %v4198_v15  ;;  %v1283_v24 = vpop.f32.mrb[18].mxu0  ;;  %1830 = vmatpush1.bf16.msra.mxu0 %v3260_v20 }
 0x217   : > { %v4210_v25 = vadd.f32 %v1283_v24, %v4193_v19  ;;  %v1285_v10 = vpop.f32.mrb[19].mxu0  ;;  %v1358_v13 = vmul.f32 %v4206_v6, %v4206_v6 }
 0x218   : > { %1470 = vst [vmem:[%s4203_s14 + $0x8] sm:$0xff] %v1282_v11  ;;  %v1286_v27 = vadd.f32 %v1285_v10, %v4198_v15 }
 0x219   : > { %1374 = vadd.xlane.f32.xlu0 %v1358_v13  ;;  %v1359_v9 = vmul.f32 %v4210_v25, %v4210_v25 }
 0x21a   : > { %1471 = vst [vmem:[%s4203_s14 + $0x18] sm:$0xff] %v1286_v27 }
 0x21c   : > { %v1289_v28 = vpop.f32.mrb[20].mxu0 }
 0x21d   : > { %v4220_v22 = vadd.f32 %v1289_v28, %v4193_v19  ;;  %v1291_v29 = vpop.f32.mrb[21].mxu0  ;;  %1376 = vadd.xlane.f32.xlu0 %v1359_v9 }
 0x21e   : > { %v1292_v30 = vadd.f32 %v1291_v29, %v4198_v15  ;;  %v1293_v31 = vpop.f32.mrb[22].mxu0 }
 0x21f   : > { %v4224_v33 = vadd.f32 %v1293_v31, %v4193_v19  ;;  %v1295_v34 = vpop.f32.mrb[23].mxu0  ;;  %v1360_v23 = vmul.f32 %v4220_v22, %v4220_v22 }
 0x220   : > { %1472 = vst [vmem:[%s4203_s14 + $0x28] sm:$0xff] %v1292_v30  ;;  %v1296_v35 = vadd.f32 %v1295_v34, %v4198_v15 }
 0x221   : > { %1378 = vadd.xlane.f32.xlu1 %v1360_v23  ;;  %v1361_v38 = vmul.f32 %v4224_v33, %v4224_v33 }
 0x222   : > { %1473 = vst [vmem:[%s4203_s14 + $0x38] sm:$0xff] %v1296_v35 }
 0x224   : > { %v1299_v39 = vpop.f32.mrb[24].mxu0 }
 0x225   : > { %v4234_v37 = vadd.f32 %v1299_v39, %v4193_v19  ;;  %v1301_v26 = vpop.f32.mrb[25].mxu0  ;;  %1380 = vadd.xlane.f32.xlu1 %v1361_v38 }
 0x226   : > { %v1302_v41 = vadd.f32 %v1301_v26, %v4198_v15  ;;  %v1303_v46 = vpop.f32.mrb[26].mxu0 }
 0x227   : > { %v4238_v47 = vadd.f32 %v1303_v46, %v4193_v19  ;;  %v1305_v32 = vpop.f32.mrb[27].mxu0  ;;  %v1362_v48 = vmul.f32 %v4234_v37, %v4234_v37 }
 0x228   : > { %1474 = vst [vmem:[%s4203_s14 + $0x48] sm:$0xff] %v1302_v41  ;;  %v1306_v45 = vadd.f32 %v1305_v32, %v4198_v15 }
 0x229   : > { %1382 = vadd.xlane.f32.xlu0 %v1362_v48  ;;  %v1363_v36 = vmul.f32 %v4238_v47, %v4238_v47 }
 0x22a   : > { %1475 = vst [vmem:[%s4203_s14 + $0x58] sm:$0xff] %v1306_v45 }
 0x22b   : > { %1384 = vadd.xlane.f32.xlu1 %v1363_v36 }
 0x22c   : > { %v1309_v49 = vpop.f32.mrb[28].mxu0 }
 0x22d   : > { %v4248_v51 = vadd.f32 %v1309_v49, %v4193_v19  ;;  %v1311_v40 = vpop.f32.mrb[29].mxu0 }
 0x22e   : > { %v1312_v44 = vadd.f32 %v1311_v40, %v4198_v15  ;;  %v1313_v52 = vpop.f32.mrb[30].mxu0 }
 0x22f   : > { %v4252_v50 = vadd.f32 %v1313_v52, %v4193_v19  ;;  %v1315_v53 = vpop.f32.mrb[31].mxu0  ;;  %v1364_v54 = vmul.f32 %v4248_v51, %v4248_v51 }
 0x230   : > { %1476 = vst [vmem:[%s4203_s14 + $0x68] sm:$0xff] %v1312_v44  ;;  %v1316_v56 = vadd.f32 %v1315_v53, %v4198_v15 }
 0x231   : > { %1386 = vadd.xlane.f32.xlu0 %v1364_v54  ;;  %v1365_v57 = vmul.f32 %v4252_v50, %v4252_v50 }
 0x232   : > { %1477 = vst [vmem:[%s4203_s14 + $0x78] sm:$0xff] %v1316_v56 }
 0x233   : > { %1388 = vadd.xlane.f32.xlu1 %v1365_v57 }
 0x234   : > { %v1319_v59 = vpop.f32.mrb[32].mxu0 }
 0x235   : > { %v4268_v63 = vadd.f32 %v1319_v59, %v4193_v19  ;;  %v1321_v1 = vpop.f32.mrb[33].mxu0 }
 0x236   : > { %v1322_v58 = vadd.f32 %v1321_v1, %v4198_v15  ;;  %v1323_v3 = vpop.f32.mrb[34].mxu0 }
 0x237   : > { %v4278_v4 = vadd.f32 %v1323_v3, %v4193_v19  ;;  %v1325_v7 = vpop.f32.mrb[35].mxu0  ;;  %v1366_v8 = vmul.f32 %v4268_v63, %v4268_v63 }
 0x238   : > { %1478 = vst [vmem:[%s4203_s14 + $0x88] sm:$0xff] %v1322_v58  ;;  %v1326_v61 = vadd.f32 %v1325_v7, %v4198_v15 }
 0x239   : > { %1390 = vadd.xlane.f32.xlu0 %v1366_v8  ;;  %v1367_v14 = vmul.f32 %v4278_v4, %v4278_v4 }
 0x23a   : > { %1479 = vst [vmem:[%s4203_s14 + $0x98] sm:$0xff] %v1326_v61 }
 0x23b   : > { %1392 = vadd.xlane.f32.xlu1 %v1367_v14 }
 0x23c   : > { %v1329_v21 = vpop.f32.mrb[36].mxu0 }
 0x23d   : > { %v4300_v11 = vadd.f32 %v1329_v21, %v4193_v19  ;;  %v1331_v24 = vpop.f32.mrb[37].mxu0 }
 0x23e   : > { %v1332_v10 = vadd.f32 %v1331_v24, %v4198_v15  ;;  %v1333_v13 = vpop.f32.mrb[38].mxu0 }
 0x23f   : > { %v4304_v27 = vadd.f32 %v1333_v13, %v4193_v19  ;;  %v1335_v9 = vpop.f32.mrb[39].mxu0  ;;  %v1368_v28 = vmul.f32 %v4300_v11, %v4300_v11 }
 0x240   : > { %1480 = vst [vmem:[%s4203_s14 + $0xa8] sm:$0xff] %v1332_v10  ;;  %v1336_v29 = vadd.f32 %v1335_v9, %v4198_v15 }
 0x241   : > { %1394 = vadd.xlane.f32.xlu0 %v1368_v28  ;;  %v1369_v30 = vmul.f32 %v4304_v27, %v4304_v27 }
 0x242   : > { %1481 = vst [vmem:[%s4203_s14 + $0xb8] sm:$0xff] %v1336_v29 }
 0x243   : > { %1396 = vadd.xlane.f32.xlu1 %v1369_v30 }
 0x244   : > { %v1339_v31 = vpop.f32.mrb[40].mxu0 }
 0x245   : > { %v4314_v34 = vadd.f32 %v1339_v31, %v4193_v19  ;;  %v1341_v23 = vpop.f32.mrb[41].mxu0 }
 0x246   : > { %v1342_v35 = vadd.f32 %v1341_v23, %v4198_v15  ;;  %v1343_v38 = vpop.f32.mrb[42].mxu0 }
 0x247   : > { %v4318_v39 = vadd.f32 %v1343_v38, %v4193_v19  ;;  %v1345_v26 = vpop.f32.mrb[43].mxu0  ;;  %v1370_v41 = vmul.f32 %v4314_v34, %v4314_v34 }
 0x248   : > { %1482 = vst [vmem:[%s4203_s14 + $0xc8] sm:$0xff] %v1342_v35  ;;  %v1346_v46 = vadd.f32 %v1345_v26, %v4198_v15 }
 0x249   : > { %1398 = vadd.xlane.f32.xlu0 %v1370_v41  ;;  %v1371_v32 = vmul.f32 %v4318_v39, %v4318_v39 }
 0x24a   : > { %1483 = vst [vmem:[%s4203_s14 + $0xd8] sm:$0xff] %v1346_v46 }
 0x24b   : > { %1400 = vadd.xlane.f32.xlu1 %v1371_v32 }
 0x24c   : > { %v1349_v48 = vpop.f32.mrb[44].mxu0 }
 0x24d   : > { %v4328_v45 = vadd.f32 %v1349_v48, %v4193_v19  ;;  %v1351_v36 = vpop.f32.mrb[45].mxu0 }
 0x24e   : > { %v1352_v49 = vadd.f32 %v1351_v36, %v4198_v15  ;;  %v1353_v40 = vpop.f32.mrb[46].mxu0 }
 0x24f   : > { %v4332_v44 = vadd.f32 %v1353_v40, %v4193_v19  ;;  %v1355_v52 = vpop.f32.mrb[47].mxu0  ;;  %v1372_v53 = vmul.f32 %v4328_v45, %v4328_v45 }
 0x250   : > { %1484 = vst [vmem:[%s4203_s14 + $0xe8] sm:$0xff] %v1352_v49  ;;  %v1356_v54 = vadd.f32 %v1355_v52, %v4198_v15 }
 0x251   : > { %1402 = vadd.xlane.f32.xlu0 %v1372_v53  ;;  %v1373_v56 = vmul.f32 %v4332_v44, %v4332_v44 }
 0x252   : > { %1485 = vst [vmem:[%s4203_s14 + $0xf8] sm:$0xff] %v1356_v54 }
 0x253   : > { %1404 = vadd.xlane.f32.xlu1 %v1373_v56 }
 0x2a6   : > { %v1375_v57 = vpop.xlane.xlu0 %1374 }
 0x2a7   : > { %v1406_v59 = vmax.f32 %v1375_v57, 1e-24 }
 0x2a9   : > { %3295 = vrsqrt.f32 %v1406_v59 }
 0x2aa   : > { %v1377_v60 = vpop.xlane.xlu0 %1376 }
 0x2ab   : > { %v1407_v19 = vmax.f32 %v1377_v60, 1e-24 }
 0x2ad   : > { %3297 = vrsqrt.f32 %v1407_v19 }
 0x2ae   : > { %v1379_v62 = vpop.xlane.xlu1 %1378 }
 0x2af   : > { %v1408_v1 = vmax.f32 %v1379_v62, 1e-24 }
 0x2b1   : > { %3299 = vrsqrt.f32 %v1408_v1 }
 0x2b2   : > { %v1381_v0 = vpop.xlane.xlu1 %1380 }
 0x2b3   : > { %v3296_v2 = vpop.eup %3295  ;;  %v1409_v15 = vmax.f32 %v1381_v0, 1e-24 }
 0x2b4   : > { %v1438_v58 = vmul.f32 %v3296_v2, %v4206_v6 }
 0x2b5   : > { %3301 = vrsqrt.f32 %v1409_v15 }
 0x2b6   : > { %1454 = vst [vmem:[%s4203_s14] sm:$0xff] %v1438_v58  ;;  %v1383_v3 = vpop.xlane.xlu0 %1382  ;;  %v1486_v14 = vmul.f32 5.0, %v1438_v58 }
 0x2b7   : > { %v3298_v7 = vpop.eup %3297  ;;  %v1410_v8 = vmax.f32 %v1383_v3, 1e-24 }
 0x2b8   : > { %v1439_v61 = vmul.f32 %v3298_v7, %v4210_v25  ;;  %v1385_v5 = vpop.xlane.xlu1 %1384 }
 0x2b9   : > { %3303 = vrsqrt.f32 %v1410_v8  ;;  %v1411_v12 = vmax.f32 %v1385_v5, 1e-24 }
 0x2ba   : > { %1455 = vst [vmem:[%s4203_s14 + $0x10] sm:$0xff] %v1439_v61  ;;  %v1487_v18 = vmul.f32 5.0, %v1439_v61 }
 0x2bb   : > { %v3300_v20 = vpop.eup %3299  ;;  %3305 = vrsqrt.f32 %v1411_v12 }
 0x2bc   : > { %v1502_v21 = vpack.c.bf16 %v1487_v18, %v1486_v14  ;;  %v1440_v6 = vmul.f32 %v3300_v20, %v4220_v22 }
 0x2be   : > { %1735 = vmatmul.mubr.bf16.vlgmr.msra.gmra.mrb[48].mxu1 %v1502_v21  ;;  %1848 = vmatmul.mubr.bf16.vlgmr.msra.gmra.mrb[48].mxu0 %v1502_v21  ;;  %v1387_v24 = vpop.xlane.xlu0 %1386  ;;  %1456 = vst [vmem:[%s4203_s14 + $0x20] sm:$0xff] %v1440_v6  ;;  %v1488_v29 = vmul.f32 5.0, %v1440_v6 }
 0x2bf   : > { %v3302_v10 = vpop.eup %3301  ;;  %v1412_v13 = vmax.f32 %v1387_v24, 1e-24  ;;  %1744 = vmatprep.mubr.bf16.mxu1 %v3679_v55  ;;  %1857 = vmatprep.mubr.bf16.mxu0 %v3679_v55 }
 0x2c0   : > { %v1389_v25 = vpop.xlane.xlu1 %1388  ;;  %v1441_v9 = vmul.f32 %v3302_v10, %v4224_v33 }
 0x2c1   : > { %3307 = vrsqrt.f32 %v1412_v13  ;;  %v1413_v28 = vmax.f32 %v1389_v25, 1e-24 }
 0x2c2   : > { %1457 = vst [vmem:[%s4203_s14 + $0x30] sm:$0xff] %v1441_v9  ;;  %v1489_v22 = vmul.f32 5.0, %v1441_v9 }
 0x2c3   : > { %v3304_v30 = vpop.eup %3303  ;;  %3309 = vrsqrt.f32 %v1413_v28 }
 0x2c4   : > { %v1503_v31 = vpack.c.bf16 %v1489_v22, %v1488_v29  ;;  %v1442_v23 = vmul.f32 %v3304_v30, %v4234_v37 }
 0x2c5   : > { %v3306_v35 = vpop.eup %3305 }
 0x2c6   : > { %1745 = vmatmul.mubr.bf16.gmra.mrb[52].mxu1 %v1503_v31  ;;  %1858 = vmatmul.mubr.bf16.gmra.mrb[52].mxu0 %v1503_v31  ;;  %v1391_v38 = vpop.xlane.xlu0 %1390  ;;  %v1443_v26 = vmul.f32 %v3306_v35, %v4238_v47  ;;  %1458 = vst [vmem:[%s4203_s14 + $0x40] sm:$0xff] %v1442_v23  ;;  %v1490_v37 = vmul.f32 5.0, %v1442_v23 }
 0x2c7   : > { %v1414_v41 = vmax.f32 %v1391_v38, 1e-24  ;;  %1754 = vmatprep.mubr.bf16.mxu1 %v3679_v55  ;;  %1867 = vmatprep.mubr.bf16.mxu0 %v3679_v55 }
 0x2c8   : > { %v1393_v33 = vpop.xlane.xlu1 %1392  ;;  %1459 = vst [vmem:[%s4203_s14 + $0x50] sm:$0xff] %v1443_v26  ;;  %v1491_v46 = vmul.f32 5.0, %v1443_v26 }
 0x2c9   : > { %3311 = vrsqrt.f32 %v1414_v41  ;;  %v1415_v32 = vmax.f32 %v1393_v33, 1e-24 }
 0x2ca   : > { %v1504_v36 = vpack.c.bf16 %v1491_v46, %v1490_v37 }
 0x2cb   : > { %v3308_v48 = vpop.eup %3307  ;;  %3313 = vrsqrt.f32 %v1415_v32 }
 0x2cc   : > { %v1444_v49 = vmul.f32 %v3308_v48, %v4248_v51 }
 0x2cd   : > { %v3310_v47 = vpop.eup %3309 }
 0x2ce   : > { %1755 = vmatmul.mubr.bf16.gmra.mrb[56].mxu1 %v1504_v36  ;;  %1868 = vmatmul.mubr.bf16.gmra.mrb[56].mxu0 %v1504_v36  ;;  %v1395_v40 = vpop.xlane.xlu0 %1394  ;;  %v1445_v52 = vmul.f32 %v3310_v47, %v4252_v50  ;;  %1460 = vst [vmem:[%s4203_s14 + $0x60] sm:$0xff] %v1444_v49  ;;  %v1492_v51 = vmul.f32 5.0, %v1444_v49 }
 0x2cf   : > { %v1416_v53 = vmax.f32 %v1395_v40, 1e-24  ;;  %1764 = vmatprep.mubr.bf16.mxu1 %v3679_v55  ;;  %1877 = vmatprep.mubr.bf16.mxu0 %v3679_v55 }
 0x2d0   : > { %v1397_v54 = vpop.xlane.xlu1 %1396  ;;  %1461 = vst [vmem:[%s4203_s14 + $0x70] sm:$0xff] %v1445_v52  ;;  %v1493_v56 = vmul.f32 5.0, %v1445_v52 }
 0x2d1   : > { %3315 = vrsqrt.f32 %v1416_v53  ;;  %v1417_v57 = vmax.f32 %v1397_v54, 1e-24 }
 0x2d2   : > { %v1505_v60 = vpack.c.bf16 %v1493_v56, %v1492_v51 }
 0x2d3   : > { %v3312_v59 = vpop.eup %3311  ;;  %3317 = vrsqrt.f32 %v1417_v57 }
 0x2d4   : > { %v1446_v19 = vmul.f32 %v3312_v59, %v4268_v63 }
 0x2d5   : > { %v3314_v50 = vpop.eup %3313 }
 0x2d6   : > { %1765 = vmatmul.mubr.bf16.gmra.mrb[60].mxu1 %v1505_v60  ;;  %1878 = vmatmul.mubr.bf16.gmra.mrb[60].mxu0 %v1505_v60  ;;  %v1399_v62 = vpop.xlane.xlu0 %1398  ;;  %v1447_v1 = vmul.f32 %v3314_v50, %v4278_v4  ;;  %1462 = vst [vmem:[%s4203_s14 + $0x80] sm:$0xff] %v1446_v19  ;;  %v1494_v63 = vmul.f32 5.0, %v1446_v19 }
 0x2d7   : > { %v1418_v0 = vmax.f32 %v1399_v62, 1e-24  ;;  %1774 = vmatprep.mubr.bf16.mxu1 %v3679_v55  ;;  %1887 = vmatprep.mubr.bf16.mxu0 %v3679_v55 }
 0x2d8   : > { %v1401_v2 = vpop.xlane.xlu1 %1400  ;;  %1463 = vst [vmem:[%s4203_s14 + $0x90] sm:$0xff] %v1447_v1  ;;  %v1495_v15 = vmul.f32 5.0, %v1447_v1 }
 0x2d9   : > { %3319 = vrsqrt.f32 %v1418_v0  ;;  %v1419_v58 = vmax.f32 %v1401_v2, 1e-24 }
 0x2da   : > { %v1506_v7 = vpack.c.bf16 %v1495_v15, %v1494_v63 }
 0x2db   : > { %v3316_v3 = vpop.eup %3315  ;;  %3321 = vrsqrt.f32 %v1419_v58 }
 0x2dc   : > { %v1448_v8 = vmul.f32 %v3316_v3, %v4300_v11 }
 0x2dd   : > { %v3318_v4 = vpop.eup %3317 }
 0x2de   : > { %1775 = vmatmul.mubr.bf16.gmra.mrb[64].mxu1 %v1506_v7  ;;  %1888 = vmatmul.mubr.bf16.gmra.mrb[64].mxu0 %v1506_v7  ;;  %v1403_v61 = vpop.xlane.xlu0 %1402  ;;  %v1449_v5 = vmul.f32 %v3318_v4, %v4304_v27  ;;  %1464 = vst [vmem:[%s4203_s14 + $0xa0] sm:$0xff] %v1448_v8  ;;  %v1496_v11 = vmul.f32 5.0, %v1448_v8 }
 0x2df   : > { %v1420_v12 = vmax.f32 %v1403_v61, 1e-24  ;;  %1784 = vmatprep.mubr.bf16.mxu1 %v3679_v55  ;;  %1897 = vmatprep.mubr.bf16.mxu0 %v3679_v55 }
 0x2e0   : > { %v1405_v14 = vpop.xlane.xlu1 %1404  ;;  %1465 = vst [vmem:[%s4203_s14 + $0xb0] sm:$0xff] %v1449_v5  ;;  %v1497_v18 = vmul.f32 5.0, %v1449_v5 }
 0x2e1   : > { %3323 = vrsqrt.f32 %v1420_v12  ;;  %v1421_v20 = vmax.f32 %v1405_v14, 1e-24 }
 0x2e2   : > { %v1507_v6 = vpack.c.bf16 %v1497_v18, %v1496_v11 }
 0x2e3   : > { %v3320_v21 = vpop.eup %3319  ;;  %3325 = vrsqrt.f32 %v1421_v20 }
 0x2e4   : > { %v1450_v24 = vmul.f32 %v3320_v21, %v4314_v34 }
 0x2e5   : > { %v3322_v27 = vpop.eup %3321 }
 0x2e6   : > { %1785 = vmatmul.mubr.bf16.gmra.mrb[68].mxu1 %v1507_v6  ;;  %1898 = vmatmul.mubr.bf16.gmra.mrb[68].mxu0 %v1507_v6  ;;  %v1451_v10 = vmul.f32 %v3322_v27, %v4318_v39  ;;  %1466 = vst [vmem:[%s4203_s14 + $0xc0] sm:$0xff] %v1450_v24  ;;  %v1498_v25 = vmul.f32 5.0, %v1450_v24 }
 0x2e7   : > { %1794 = vmatprep.mubr.bf16.mxu1 %v3679_v55  ;;  %1907 = vmatprep.mubr.bf16.mxu0 %v3679_v55 }
 0x2e8   : > { %1467 = vst [vmem:[%s4203_s14 + $0xd0] sm:$0xff] %v1451_v10  ;;  %v1499_v13 = vmul.f32 5.0, %v1451_v10 }
 0x2ea   : > { %v1508_v28 = vpack.c.bf16 %v1499_v13, %v1498_v25 }
 0x2eb   : > { %v3324_v9 = vpop.eup %3323 }
 0x2ec   : > { %v1452_v29 = vmul.f32 %v3324_v9, %v4328_v45 }
 0x2ed   : > { %v3326_v34 = vpop.eup %3325 }
 0x2ee   : > { %1795 = vmatmul.mubr.bf16.gmra.mrb[72].mxu1 %v1508_v28  ;;  %1908 = vmatmul.mubr.bf16.gmra.mrb[72].mxu0 %v1508_v28  ;;  %v1453_v22 = vmul.f32 %v3326_v34, %v4332_v44  ;;  %1468 = vst [vmem:[%s4203_s14 + $0xe0] sm:$0xff] %v1452_v29  ;;  %v1500_v30 = vmul.f32 5.0, %v1452_v29 }
 0x2ef   : > { %1804 = vmatprep.mubr.bf16.mxu1 %v3679_v55  ;;  %1917 = vmatprep.mubr.bf16.mxu0 %v3679_v55 }
 0x2f0   : > { %1469 = vst [vmem:[%s4203_s14 + $0xf0] sm:$0xff] %v1453_v22  ;;  %v1501_v39 = vmul.f32 5.0, %v1453_v22  ;;  %s4580_s14 = scalar_lea.vmem [#allocation2], %s3806_s13 }
 0x2f2   : > { %v1509_v31 = vpack.c.bf16 %v1501_v39, %v1500_v30 }
 0x2f6   : > { %1805 = vmatmul.mubr.bf16.gmra.mrb[76].mxu1 %v1509_v31  ;;  %1918 = vmatmul.mubr.bf16.gmra.mrb[76].mxu0 %v1509_v31 }
 0x391   : > { %v1736_v23 = vpop.f32.mrb[48].mxu1  ;;  %v1849_v35 = vpop.f32.mrb[48].mxu0 }
 0x392   : > { %v1928_v38 = vmul.f32 1.442695, %v1736_v23  ;;  %v1932_v45 = vmul.f32 1.442695, %v1849_v35  ;;  %v1738_v26 = vpop.f32.mrb[49].mxu1  ;;  %v1851_v41 = vpop.f32.mrb[49].mxu0 }
 0x393   : > { %v1930_v33 = vmul.f32 1.442695, %v1738_v26  ;;  %v1934_v46 = vmul.f32 1.442695, %v1851_v41  ;;  %v1740_v44 = vpop.f32.mrb[50].mxu1  ;;  %v1853_v32 = vpop.f32.mrb[50].mxu0 }
 0x394   : > { %3327 = vpow2.f32 %v1928_v38  ;;  %v1936_v37 = vmul.f32 1.442695, %v1740_v44  ;;  %v1742_v48 = vpop.f32.mrb[51].mxu1  ;;  %v1855_v55 = vpop.f32.mrb[51].mxu0  ;;  %v1940_v36 = vmul.f32 1.442695, %v1853_v32 }
 0x395   : > { %3329 = vpow2.f32 %v1932_v45  ;;  %v1938_v49 = vmul.f32 1.442695, %v1742_v48  ;;  %v1942_v47 = vmul.f32 1.442695, %v1855_v55 }
 0x396   : > { %3331 = vpow2.f32 %v1930_v33 }
 0x397   : > { %3333 = vpow2.f32 %v1934_v46 }
 0x398   : > { %3335 = vpow2.f32 %v1936_v37 }
 0x399   : > { %3337 = vpow2.f32 %v1940_v36  ;;  %v1746_v40 = vpop.f32.mrb[52].mxu1  ;;  %v1859_v52 = vpop.f32.mrb[52].mxu0 }
 0x39a   : > { %3339 = vpow2.f32 %v1938_v49  ;;  %v1944_v53 = vmul.f32 1.442695, %v1746_v40  ;;  %v1948_v54 = vmul.f32 1.442695, %v1859_v52  ;;  %v1748_v56 = vpop.f32.mrb[53].mxu1  ;;  %v1861_v57 = vpop.f32.mrb[53].mxu0 }
 0x39b   : > { %3341 = vpow2.f32 %v1942_v47  ;;  %v1946_v51 = vmul.f32 1.442695, %v1748_v56  ;;  %v1950_v59 = vmul.f32 1.442695, %v1861_v57  ;;  %v1750_v60 = vpop.f32.mrb[54].mxu1  ;;  %v1863_v19 = vpop.f32.mrb[54].mxu0 }
 0x39c   : > { %3343 = vpow2.f32 %v1944_v53  ;;  %v1952_v50 = vmul.f32 1.442695, %v1750_v60  ;;  %v1752_v62 = vpop.f32.mrb[55].mxu1  ;;  %v1865_v1 = vpop.f32.mrb[55].mxu0  ;;  %v1956_v0 = vmul.f32 1.442695, %v1863_v19 }
 0x39d   : > { %3345 = vpow2.f32 %v1948_v54  ;;  %v1954_v15 = vmul.f32 1.442695, %v1752_v62  ;;  %v1958_v3 = vmul.f32 1.442695, %v1865_v1 }
 0x39e   : > { %v3328_v2 = vpop.eup %3327  ;;  %3347 = vpow2.f32 %v1946_v51 }
 0x39f   : > { %v3330_v58 = vpop.eup %3329  ;;  %v4388_v63 = vmul.f32 %v3328_v2, %v3854_v16  ;;  %3349 = vpow2.f32 %v1950_v59 }
 0x3a0   : > { %v3332_v7 = vpop.eup %3331  ;;  %v4391_v8 = vmul.f32 %v3330_v58, %v3901_v42  ;;  %3351 = vpow2.f32 %v1952_v50 }
 0x3a1   : > { %v3334_v4 = vpop.eup %3333  ;;  %v4394_v61 = vmul.f32 %v3332_v7, %v3858_v17  ;;  %3353 = vpow2.f32 %v1956_v0  ;;  %v1756_v5 = vpop.f32.mrb[56].mxu1  ;;  %2124 = vst [vmem:[%s4580_s14] sm:$0xff] (!%p2929_p0), %v4388_v63 }
 0x3a2   : > { %v1869_v12 = vpop.f32.mrb[56].mxu0  ;;  %v3336_v14 = vpop.eup %3335  ;;  %v4397_v18 = vmul.f32 %v3334_v4, %v3903_v43  ;;  %3355 = vpow2.f32 %v1954_v15  ;;  %v1960_v20 = vmul.f32 1.442695, %v1756_v5  ;;  %2126 = vst [vmem:[%s4580_s14 + $0x10] sm:$0xff] (!%p2929_p0), %v4391_v8 }
 0x3a3   : > { %v1964_v11 = vmul.f32 1.442695, %v1869_v12  ;;  %v1758_v21 = vpop.f32.mrb[57].mxu1  ;;  %v1871_v6 = vpop.f32.mrb[57].mxu0  ;;  %v4400_v27 = vmul.f32 %v3336_v14, %v3854_v16  ;;  %3357 = vpow2.f32 %v1958_v3  ;;  %2125 = vst [vmem:[%s4580_s14 + $0x8] sm:$0xff] (!%p2929_p0), %v4394_v61 }
 0x3a4   : > { %v3338_v24 = vpop.eup %3337  ;;  %v1962_v10 = vmul.f32 1.442695, %v1758_v21  ;;  %v1966_v13 = vmul.f32 1.442695, %v1871_v6  ;;  %v1760_v25 = vpop.f32.mrb[58].mxu1  ;;  %3359 = vpow2.f32 %v1960_v20  ;;  %2127 = vst [vmem:[%s4580_s14 + $0x18] sm:$0xff] (!%p2929_p0), %v4397_v18 }
 0x3a5   : > { %v1873_v9 = vpop.f32.mrb[58].mxu0  ;;  %v3340_v28 = vpop.eup %3339  ;;  %v4403_v29 = vmul.f32 %v3338_v24, %v3901_v42  ;;  %v1968_v34 = vmul.f32 1.442695, %v1760_v25  ;;  %3361 = vpow2.f32 %v1964_v11  ;;  %2128 = vst [vmem:[%s4580_s14 + $0x20] sm:$0xff] (!%p2929_p0), %v4400_v27 }
 0x3a6   : > { %v1762_v22 = vpop.f32.mrb[59].mxu1  ;;  %v1875_v39 = vpop.f32.mrb[59].mxu0  ;;  %v4406_v31 = vmul.f32 %v3340_v28, %v3858_v17  ;;  %v1972_v23 = vmul.f32 1.442695, %v1873_v9  ;;  %3363 = vpow2.f32 %v1962_v10 }
 0x3a7   : > { %v3342_v30 = vpop.eup %3341  ;;  %v1970_v45 = vmul.f32 1.442695, %v1762_v22  ;;  %3365 = vpow2.f32 %v1966_v13  ;;  %v1974_v33 = vmul.f32 1.442695, %v1875_v39  ;;  %2130 = vst [vmem:[%s4580_s14 + $0x30] sm:$0xff] (!%p2929_p0), %v4403_v29 }
 0x3a8   : > { %v3344_v35 = vpop.eup %3343  ;;  %v4409_v38 = vmul.f32 %v3342_v30, %v3903_v43  ;;  %3367 = vpow2.f32 %v1968_v34  ;;  %2129 = vst [vmem:[%s4580_s14 + $0x28] sm:$0xff] (!%p2929_p0), %v4406_v31 }
 0x3a9   : > { %v3346_v26 = vpop.eup %3345  ;;  %v4412_v41 = vmul.f32 %v3344_v35, %v3854_v16  ;;  %3369 = vpow2.f32 %v1972_v23  ;;  %v1766_v48 = vpop.f32.mrb[60].mxu1 }
 0x3aa   : > { %v3348_v46 = vpop.eup %3347  ;;  %v4415_v44 = vmul.f32 %v3346_v26, %v3901_v42  ;;  %v1879_v55 = vpop.f32.mrb[60].mxu0  ;;  %3371 = vpow2.f32 %v1970_v45  ;;  %v1976_v47 = vmul.f32 1.442695, %v1766_v48  ;;  %2131 = vst [vmem:[%s4580_s14 + $0x38] sm:$0xff] (!%p2929_p0), %v4409_v38 }
 0x3ab   : > { %v3350_v32 = vpop.eup %3349  ;;  %v4418_v37 = vmul.f32 %v3348_v46, %v3858_v17  ;;  %v1980_v40 = vmul.f32 1.442695, %v1879_v55  ;;  %v1768_v52 = vpop.f32.mrb[61].mxu1  ;;  %3373 = vpow2.f32 %v1974_v33  ;;  %2132 = vst [vmem:[%s4580_s14 + $0x40] sm:$0xff] (!%p2929_p0), %v4412_v41 }
 0x3ac   : > { %v3352_v36 = vpop.eup %3351  ;;  %v4421_v49 = vmul.f32 %v3350_v32, %v3903_v43  ;;  %v1881_v53 = vpop.f32.mrb[61].mxu0  ;;  %v1978_v57 = vmul.f32 1.442695, %v1768_v52  ;;  %3375 = vpow2.f32 %v1976_v47  ;;  %2134 = vst [vmem:[%s4580_s14 + $0x50] sm:$0xff] (!%p2929_p0), %v4415_v44 }
 0x3ad   : > { %v3354_v54 = vpop.eup %3353  ;;  %v4424_v56 = vmul.f32 %v3352_v36, %v3854_v16  ;;  %v1982_v51 = vmul.f32 1.442695, %v1881_v53  ;;  %v1770_v59 = vpop.f32.mrb[62].mxu1  ;;  %3377 = vpow2.f32 %v1980_v40  ;;  %2133 = vst [vmem:[%s4580_s14 + $0x48] sm:$0xff] (!%p2929_p0), %v4418_v37 }
 0x3ae   : > { %v1883_v60 = vpop.f32.mrb[62].mxu0  ;;  %v3356_v19 = vpop.eup %3355  ;;  %v4427_v50 = vmul.f32 %v3354_v54, %v3901_v42  ;;  %v1984_v62 = vmul.f32 1.442695, %v1770_v59  ;;  %3379 = vpow2.f32 %v1978_v57  ;;  %2135 = vst [vmem:[%s4580_s14 + $0x58] sm:$0xff] (!%p2929_p0), %v4421_v49 }
 0x3af   : > { %v1772_v1 = vpop.f32.mrb[63].mxu1  ;;  %v1885_v0 = vpop.f32.mrb[63].mxu0  ;;  %v4430_v15 = vmul.f32 %v3356_v19, %v3858_v17  ;;  %v1988_v58 = vmul.f32 1.442695, %v1883_v60  ;;  %3381 = vpow2.f32 %v1982_v51  ;;  %2136 = vst [vmem:[%s4580_s14 + $0x60] sm:$0xff] (!%p2929_p0), %v4424_v56 }
 0x3b0   : > { %v3358_v2 = vpop.eup %3357  ;;  %v1986_v4 = vmul.f32 1.442695, %v1772_v1  ;;  %v1990_v14 = vmul.f32 1.442695, %v1885_v0  ;;  %3383 = vpow2.f32 %v1984_v62  ;;  %2138 = vst [vmem:[%s4580_s14 + $0x70] sm:$0xff] (!%p2929_p0), %v4427_v50 }
 0x3b1   : > { %v3360_v3 = vpop.eup %3359  ;;  %v4433_v7 = vmul.f32 %v3358_v2, %v3903_v43  ;;  %3385 = vpow2.f32 %v1988_v58  ;;  %v1776_v24 = vpop.f32.mrb[64].mxu1  ;;  %2137 = vst [vmem:[%s4580_s14 + $0x68] sm:$0xff] (!%p2929_p0), %v4430_v15 }
 0x3b2   : > { %v3362_v5 = vpop.eup %3361  ;;  %v4436_v12 = vmul.f32 %v3360_v3, %v3854_v16  ;;  %v1889_v10 = vpop.f32.mrb[64].mxu0  ;;  %3387 = vpow2.f32 %v1986_v4  ;;  %v1992_v9 = vmul.f32 1.442695, %v1776_v24 }
 0x3b3   : > { %v3364_v20 = vpop.eup %3363  ;;  %v4439_v11 = vmul.f32 %v3362_v5, %v3901_v42  ;;  %v1996_v28 = vmul.f32 1.442695, %v1889_v10  ;;  %v1778_v34 = vpop.f32.mrb[65].mxu1  ;;  %3389 = vpow2.f32 %v1990_v14  ;;  %2139 = vst [vmem:[%s4580_s14 + $0x78] sm:$0xff] (!%p2929_p0), %v4433_v7 }
 0x3b4   : > { %v3366_v21 = vpop.eup %3365  ;;  %v4442_v6 = vmul.f32 %v3364_v20, %v3858_v17  ;;  %v1891_v22 = vpop.f32.mrb[65].mxu0  ;;  %v1994_v23 = vmul.f32 1.442695, %v1778_v34  ;;  %3391 = vpow2.f32 %v1992_v9  ;;  %2140 = vst [vmem:[%s4580_s14 + $0x80] sm:$0xff] (!%p2929_p0), %v4436_v12 }
 0x3b5   : > { %v3368_v13 = vpop.eup %3367  ;;  %v4445_v25 = vmul.f32 %v3366_v21, %v3903_v43  ;;  %v1998_v35 = vmul.f32 1.442695, %v1891_v22  ;;  %v1780_v45 = vpop.f32.mrb[66].mxu1  ;;  %3393 = vpow2.f32 %v1996_v28  ;;  %2142 = vst [vmem:[%s4580_s14 + $0x90] sm:$0xff] (!%p2929_p0), %v4439_v11 }
 0x3b6   : > { %v3370_v39 = vpop.eup %3369  ;;  %v4448_v30 = vmul.f32 %v3368_v13, %v3854_v16  ;;  %v1893_v26 = vpop.f32.mrb[66].mxu0  ;;  %v2000_v32 = vmul.f32 1.442695, %v1780_v45  ;;  %3395 = vpow2.f32 %v1994_v23  ;;  %2141 = vst [vmem:[%s4580_s14 + $0x88] sm:$0xff] (!%p2929_p0), %v4442_v6 }
 0x3b7   : > { %v3372_v33 = vpop.eup %3371  ;;  %v4451_v46 = vmul.f32 %v3370_v39, %v3901_v42  ;;  %v1782_v48 = vpop.f32.mrb[67].mxu1  ;;  %v2004_v40 = vmul.f32 1.442695, %v1893_v26  ;;  %3397 = vpow2.f32 %v1998_v35  ;;  %2143 = vst [vmem:[%s4580_s14 + $0x98] sm:$0xff] (!%p2929_p0), %v4445_v25 }
 0x3b8   : > { %v1895_v55 = vpop.f32.mrb[67].mxu0  ;;  %v3374_v36 = vpop.eup %3373  ;;  %v4454_v47 = vmul.f32 %v3372_v33, %v3858_v17  ;;  %v2002_v54 = vmul.f32 1.442695, %v1782_v48  ;;  %3399 = vpow2.f32 %v2000_v32  ;;  %2144 = vst [vmem:[%s4580_s14 + $0xa0] sm:$0xff] (!%p2929_p0), %v4448_v30 }
 0x3b9   : > { %v3376_v52 = vpop.eup %3375  ;;  %v4457_v53 = vmul.f32 %v3374_v36, %v3903_v43  ;;  %v2006_v59 = vmul.f32 1.442695, %v1895_v55  ;;  %3401 = vpow2.f32 %v2004_v40  ;;  %v1786_v0 = vpop.f32.mrb[68].mxu1  ;;  %2146 = vst [vmem:[%s4580_s14 + $0xb0] sm:$0xff] (!%p2929_p0), %v4451_v46 }
 0x3ba   : > { %v3378_v57 = vpop.eup %3377  ;;  %v4460_v51 = vmul.f32 %v3376_v52, %v3854_v16  ;;  %v1899_v2 = vpop.f32.mrb[68].mxu0  ;;  %3403 = vpow2.f32 %v2002_v54  ;;  %v2008_v4 = vmul.f32 1.442695, %v1786_v0  ;;  %2145 = vst [vmem:[%s4580_s14 + $0xa8] sm:$0xff] (!%p2929_p0), %v4454_v47 }
 0x3bb   : > { %v3380_v60 = vpop.eup %3379  ;;  %v4463_v19 = vmul.f32 %v3378_v57, %v3901_v42  ;;  %v2012_v5 = vmul.f32 1.442695, %v1899_v2  ;;  %v1788_v14 = vpop.f32.mrb[69].mxu1  ;;  %3405 = vpow2.f32 %v2006_v59  ;;  %2147 = vst [vmem:[%s4580_s14 + $0xb8] sm:$0xff] (!%p2929_p0), %v4457_v53 }
 0x3bc   : > { %v3382_v62 = vpop.eup %3381  ;;  %v4466_v1 = vmul.f32 %v3380_v60, %v3858_v17  ;;  %v1901_v20 = vpop.f32.mrb[69].mxu0  ;;  %v2010_v10 = vmul.f32 1.442695, %v1788_v14  ;;  %3407 = vpow2.f32 %v2008_v4  ;;  %2148 = vst [vmem:[%s4580_s14 + $0xc0] sm:$0xff] (!%p2929_p0), %v4460_v51 }
 0x3bd   : > { %v3384_v58 = vpop.eup %3383  ;;  %v4469_v3 = vmul.f32 %v3382_v62, %v3903_v43  ;;  %v2014_v13 = vmul.f32 1.442695, %v1901_v20  ;;  %v1790_v9 = vpop.f32.mrb[70].mxu1  ;;  %3409 = vpow2.f32 %v2012_v5  ;;  %2150 = vst [vmem:[%s4580_s14 + $0xd0] sm:$0xff] (!%p2929_p0), %v4463_v19 }
 0x3be   : > { %v3386_v21 = vpop.eup %3385  ;;  %v4472_v24 = vmul.f32 %v3384_v58, %v3854_v16  ;;  %v1903_v28 = vpop.f32.mrb[70].mxu0  ;;  %v2016_v39 = vmul.f32 1.442695, %v1790_v9  ;;  %3411 = vpow2.f32 %v2010_v10  ;;  %2149 = vst [vmem:[%s4580_s14 + $0xc8] sm:$0xff] (!%p2929_p0), %v4466_v1 }
 0x3bf   : > { %v3388_v34 = vpop.eup %3387  ;;  %v4475_v22 = vmul.f32 %v3386_v21, %v3901_v42  ;;  %v1792_v23 = vpop.f32.mrb[71].mxu1  ;;  %v2020_v33 = vmul.f32 1.442695, %v1903_v28  ;;  %3413 = vpow2.f32 %v2014_v13  ;;  %2151 = vst [vmem:[%s4580_s14 + $0xd8] sm:$0xff] (!%p2929_p0), %v4469_v3 }
 0x3c0   : > { %v1905_v35 = vpop.f32.mrb[71].mxu0  ;;  %v3390_v45 = vpop.eup %3389  ;;  %v4478_v26 = vmul.f32 %v3388_v34, %v3858_v17  ;;  %v2018_v55 = vmul.f32 1.442695, %v1792_v23  ;;  %3415 = vpow2.f32 %v2016_v39  ;;  %2152 = vst [vmem:[%s4580_s14 + $0xe0] sm:$0xff] (!%p2929_p0), %v4472_v24 }
 0x3c1   : > { %v3392_v32 = vpop.eup %3391  ;;  %v4481_v48 = vmul.f32 %v3390_v45, %v3903_v43  ;;  %v2022_v52 = vmul.f32 1.442695, %v1905_v35  ;;  %3417 = vpow2.f32 %v2020_v33  ;;  %v1796_v62 = vpop.f32.mrb[72].mxu1  ;;  %2154 = vst [vmem:[%s4580_s14 + $0xf0] sm:$0xff] (!%p2929_p0), %v4475_v22 }
 0x3c2   : > { %v3394_v36 = vpop.eup %3393  ;;  %v4484_v40 = vmul.f32 %v3392_v32, %v3854_v16  ;;  %v1909_v0 = vpop.f32.mrb[72].mxu0  ;;  %3419 = vpow2.f32 %v2018_v55  ;;  %v2024_v4 = vmul.f32 1.442695, %v1796_v62  ;;  %2153 = vst [vmem:[%s4580_s14 + $0xe8] sm:$0xff] (!%p2929_p0), %v4478_v26 }
 0x3c3   : > { %v3396_v54 = vpop.eup %3395  ;;  %v4487_v57 = vmul.f32 %v3394_v36, %v3901_v42  ;;  %v2028_v5 = vmul.f32 1.442695, %v1909_v0  ;;  %v1798_v14 = vpop.f32.mrb[73].mxu1  ;;  %3421 = vpow2.f32 %v2022_v52  ;;  %2155 = vst [vmem:[%s4580_s14 + $0xf8] sm:$0xff] (!%p2929_p0), %v4481_v48 }
 0x3c4   : > { %v3398_v59 = vpop.eup %3397  ;;  %v4490_v60 = vmul.f32 %v3396_v54, %v3858_v17  ;;  %v1911_v20 = vpop.f32.mrb[73].mxu0  ;;  %v2026_v13 = vmul.f32 1.442695, %v1798_v14  ;;  %3423 = vpow2.f32 %v2024_v4  ;;  %2156 = vst [vmem:[%s4580_s14 + $0x100] sm:$0xff] (!%p2929_p0), %v4484_v40 }
 0x3c5   : > { %v3400_v2 = vpop.eup %3399  ;;  %v4493_v58 = vmul.f32 %v3398_v59, %v3903_v43  ;;  %v2030_v9 = vmul.f32 1.442695, %v1911_v20  ;;  %v1800_v28 = vpop.f32.mrb[74].mxu1  ;;  %3425 = vpow2.f32 %v2028_v5  ;;  %2158 = vst [vmem:[%s4580_s14 + $0x110] sm:$0xff] (!%p2929_p0), %v4487_v57 }
 0x3c6   : > { %v3402_v21 = vpop.eup %3401  ;;  %v4496_v10 = vmul.f32 %v3400_v2, %v3854_v16  ;;  %v1913_v34 = vpop.f32.mrb[74].mxu0  ;;  %v2032_v35 = vmul.f32 1.442695, %v1800_v28  ;;  %3427 = vpow2.f32 %v2026_v13  ;;  %2157 = vst [vmem:[%s4580_s14 + $0x108] sm:$0xff] (!%p2929_p0), %v4490_v60 }
 0x3c7   : > { %v3404_v39 = vpop.eup %3403  ;;  %v4499_v23 = vmul.f32 %v3402_v21, %v3901_v42  ;;  %v1802_v45 = vpop.f32.mrb[75].mxu1  ;;  %v2036_v36 = vmul.f32 1.442695, %v1913_v34  ;;  %3429 = vpow2.f32 %v2030_v9  ;;  %2159 = vst [vmem:[%s4580_s14 + $0x118] sm:$0xff] (!%p2929_p0), %v4493_v58 }
 0x3c8   : > { %v1915_v33 = vpop.f32.mrb[75].mxu0  ;;  %v3406_v32 = vpop.eup %3405  ;;  %v4502_v55 = vmul.f32 %v3404_v39, %v3858_v17  ;;  %v2034_v59 = vmul.f32 1.442695, %v1802_v45  ;;  %3431 = vpow2.f32 %v2032_v35  ;;  %2160 = vst [vmem:[%s4580_s14 + $0x120] sm:$0xff] (!%p2929_p0), %v4496_v10 }
 0x3c9   : > { %v3408_v54 = vpop.eup %3407  ;;  %v4505_v52 = vmul.f32 %v3406_v32, %v3903_v43  ;;  %v2038_v2 = vmul.f32 1.442695, %v1915_v33  ;;  %3433 = vpow2.f32 %v2036_v36  ;;  %v1806_v21 = vpop.f32.mrb[76].mxu1  ;;  %2162 = vst [vmem:[%s4580_s14 + $0x130] sm:$0xff] (!%p2929_p0), %v4499_v23 }
 0x3ca   : > { %v3410_v62 = vpop.eup %3409  ;;  %v4508_v0 = vmul.f32 %v3408_v54, %v3854_v16  ;;  %v1919_v28 = vpop.f32.mrb[76].mxu0  ;;  %3435 = vpow2.f32 %v2034_v59  ;;  %v2040_v39 = vmul.f32 1.442695, %v1806_v21  ;;  %2161 = vst [vmem:[%s4580_s14 + $0x128] sm:$0xff] (!%p2929_p0), %v4502_v55 }
 0x3cb   : > { %v3412_v4 = vpop.eup %3411  ;;  %v4511_v14 = vmul.f32 %v3410_v62, %v3901_v42  ;;  %v2044_v9 = vmul.f32 1.442695, %v1919_v28  ;;  %v1808_v45 = vpop.f32.mrb[77].mxu1  ;;  %3437 = vpow2.f32 %v2038_v2  ;;  %2163 = vst [vmem:[%s4580_s14 + $0x138] sm:$0xff] (!%p2929_p0), %v4505_v52 }
 0x3cc   : > { %v3414_v20 = vpop.eup %3413  ;;  %v4514_v5 = vmul.f32 %v3412_v4, %v3858_v17  ;;  %v1921_v33 = vpop.f32.mrb[77].mxu0  ;;  %v2042_v35 = vmul.f32 1.442695, %v1808_v45  ;;  %3439 = vpow2.f32 %v2040_v39  ;;  %2164 = vst [vmem:[%s4580_s14 + $0x140] sm:$0xff] (!%p2929_p0), %v4508_v0 }
 0x3cd   : > { %5118 = vst [vmem:[#allocation10_spill] sm:$0xff] %v4511_v14  ;;  %v3416_v13 = vpop.eup %3415  ;;  %v4517_v34 = vmul.f32 %v3414_v20, %v3903_v43  ;;  %v2046_v62 = vmul.f32 1.442695, %v1921_v33  ;;  %v1810_v4 = vpop.f32.mrb[78].mxu1  ;;  %3441 = vpow2.f32 %v2044_v9 }
 0x3ce   : > { %5119 = vst [vmem:[#allocation11_spill] sm:$0xff] %v4514_v5  ;;  %v3418_v32 = vpop.eup %3417  ;;  %v4520_v54 = vmul.f32 %v3416_v13, %v3854_v16  ;;  %v1923_v36 = vpop.f32.mrb[78].mxu0  ;;  %v2048_v20 = vmul.f32 1.442695, %v1810_v4  ;;  %3443 = vpow2.f32 %v2042_v35 }
 0x3cf   : > { %5120 = vst [vmem:[#allocation12_spill] sm:$0xff] %v4517_v34  ;;  %v3420_v14 = vpop.eup %3419  ;;  %v4523_v5 = vmul.f32 %v3418_v32, %v3901_v42  ;;  %v1812_v59 = vpop.f32.mrb[79].mxu1  ;;  %v2052_v13 = vmul.f32 1.442695, %v1923_v36  ;;  %3445 = vpow2.f32 %v2046_v62 }
 0x3d0   : > { %5121 = vst [vmem:[#allocation13_spill] sm:$0xff] %v4520_v54  ;;  %v1925_v21 = vpop.f32.mrb[79].mxu0  ;;  %v3422_v28 = vpop.eup %3421  ;;  %v4526_v34 = vmul.f32 %v3420_v14, %v3858_v17  ;;  %v2050_v45 = vmul.f32 1.442695, %v1812_v59  ;;  %3447 = vpow2.f32 %v2048_v20 }
 0x3d1   : > { %5122 = vst [vmem:[#allocation14_spill] sm:$0xff] %v4523_v5  ;;  %v3424_v54 = vpop.eup %3423  ;;  %v4529_v2 = vmul.f32 %v3422_v28, %v3903_v43  ;;  %v2054_v39 = vmul.f32 1.442695, %v1925_v21  ;;  %3449 = vpow2.f32 %v2052_v13 }
 0x3d2   : > { %v3426_v33 = vpop.eup %3425  ;;  %v4532_v32 = vmul.f32 %v3424_v54, %v3854_v16  ;;  %3451 = vpow2.f32 %v2050_v45  ;;  %2169 = vst [vmem:[%s4580_s14 + $0x168] sm:$0xff] (!%p2929_p0), %v4526_v34 }
 0x3d3   : > { %v3428_v4 = vpop.eup %3427  ;;  %v4535_v5 = vmul.f32 %v3426_v33, %v3901_v42  ;;  %3453 = vpow2.f32 %v2054_v39  ;;  %2171 = vst [vmem:[%s4580_s14 + $0x178] sm:$0xff] (!%p2929_p0), %v4529_v2 }
 0x3d4   : > { %v3430_v14 = vpop.eup %3429  ;;  %v4538_v9 = vmul.f32 %v3428_v4, %v3858_v17  ;;  %2172 = vst [vmem:[%s4580_s14 + $0x180] sm:$0xff] (!%p2929_p0), %v4532_v32 }
 0x3d5   : > { %v3432_v36 = vpop.eup %3431  ;;  %v4541_v35 = vmul.f32 %v3430_v14, %v3903_v43  ;;  %2174 = vst [vmem:[%s4580_s14 + $0x190] sm:$0xff] (!%p2929_p0), %v4535_v5 }
 0x3d6   : > { %v3434_v59 = vpop.eup %3433  ;;  %v4544_v54 = vmul.f32 %v3432_v36, %v3854_v16  ;;  %2173 = vst [vmem:[%s4580_s14 + $0x188] sm:$0xff] (!%p2929_p0), %v4538_v9 }
 0x3d7   : > { %v3436_v62 = vpop.eup %3435  ;;  %v4547_v21 = vmul.f32 %v3434_v59, %v3901_v42  ;;  %2175 = vst [vmem:[%s4580_s14 + $0x198] sm:$0xff] (!%p2929_p0), %v4541_v35 }
 0x3d8   : > { %v3438_v20 = vpop.eup %3437  ;;  %v4550_v28 = vmul.f32 %v3436_v62, %v3858_v17  ;;  %2176 = vst [vmem:[%s4580_s14 + $0x1a0] sm:$0xff] (!%p2929_p0), %v4544_v54 }
 0x3d9   : > { %5123 = vst [vmem:[#allocation15_spill] sm:$0xff] %v4547_v21  ;;  %v3440_v33 = vpop.eup %3439  ;;  %v4553_v13 = vmul.f32 %v3438_v20, %v3903_v43 }
 0x3da   : > { %5124 = vst [vmem:[#allocation16_spill] sm:$0xff] %v4550_v28  ;;  %v3442_v4 = vpop.eup %3441  ;;  %v4556_v45 = vmul.f32 %v3440_v33, %v3854_v16 }
 0x3db   : > { %5125 = vst [vmem:[#allocation17_spill] sm:$0xff] %v4553_v13  ;;  %v3444_v14 = vpop.eup %3443  ;;  %v4559_v39 = vmul.f32 %v3442_v4, %v3901_v42 }
 0x3dc   : > { %5126 = vst [vmem:[#allocation18_spill] sm:$0xff] %v4556_v45  ;;  %v3446_v36 = vpop.eup %3445  ;;  %v4562_v59 = vmul.f32 %v3444_v14, %v3858_v17 }
 0x3dd   : > { %5127 = vst [vmem:[#allocation19_spill] sm:$0xff] %v4559_v39  ;;  %v3448_v21 = vpop.eup %3447  ;;  %v4565_v62 = vmul.f32 %v3446_v36, %v3903_v43  ;;  %2123 = sbr.rel (%p2929_p0) target bundleno = 1000 (0x3e8), region = 52 }
 0x3de   : > { %v3450_v28 = vpop.eup %3449  ;;  %v4568_v20 = vmul.f32 %v3448_v21, %v3854_v16  ;;  %v5130_v16 = vld [vmem:[#allocation11_spill] sm:$0xff] (!%p2929_p0)  ;;  %v5134_v21 = vld [vmem:[#allocation14_spill] sm:$0xff] (!%p2929_p0)  ;;  %2181 = vst [vmem:[%s4580_s14 + $0x1c8] sm:$0xff] (!%p2929_p0), %v4562_v59 }
 0x3df   : > { %v3452_v13 = vpop.eup %3451  ;;  %v4571_v33 = vmul.f32 %v3450_v28, %v3901_v42  ;;  %2165 = vst [vmem:[%s4580_s14 + $0x148] sm:$0xff] (!%p2929_p0), %v5130_v16  ;;  %v5132_v42 = vld [vmem:[#allocation12_spill] sm:$0xff] (!%p2929_p0)  ;;  %2170 = vst [vmem:[%s4580_s14 + $0x170] sm:$0xff] (!%p2929_p0), %v5134_v21 }
 0x3e0   : > { %v3454_v45 = vpop.eup %3453  ;;  %v4574_v4 = vmul.f32 %v3452_v13, %v3858_v17  ;;  %v5131_v17 = vld [vmem:[#allocation10_spill] sm:$0xff] (!%p2929_p0)  ;;  %2167 = vst [vmem:[%s4580_s14 + $0x158] sm:$0xff] (!%p2929_p0), %v5132_v42  ;;  %v5136_v13 = vld [vmem:[#allocation15_spill] sm:$0xff] (!%p2929_p0)  ;;  %2183 = vst [vmem:[%s4580_s14 + $0x1d8] sm:$0xff] (!%p2929_p0), %v4565_v62 }
 0x3e1   : > { %5128 = vst [vmem:[#allocation20_spill] sm:$0xff] %v4571_v33  ;;  %v4577_v39 = vmul.f32 %v3454_v45, %v3903_v43  ;;  %2166 = vst [vmem:[%s4580_s14 + $0x150] sm:$0xff] (!%p2929_p0), %v5131_v17  ;;  %v5133_v43 = vld [vmem:[#allocation13_spill] sm:$0xff] (!%p2929_p0)  ;;  %v5135_v28 = vld [vmem:[#allocation16_spill] sm:$0xff] (!%p2929_p0) }
 0x3e2   : > { %2168 = vst [vmem:[%s4580_s14 + $0x160] sm:$0xff] (!%p2929_p0), %v5133_v43  ;;  %2177 = vst [vmem:[%s4580_s14 + $0x1a8] sm:$0xff] (!%p2929_p0), %v5135_v28  ;;  %v5137_v45 = vld [vmem:[#allocation17_spill] sm:$0xff] (!%p2929_p0) }
 0x3e3   : > { %5129 = vst [vmem:[#allocation21_spill] sm:$0xff] %v4577_v39  ;;  %2178 = vst [vmem:[%s4580_s14 + $0x1b0] sm:$0xff] (!%p2929_p0), %v5136_v13  ;;  %v5138_v14 = vld [vmem:[#allocation18_spill] sm:$0xff] (!%p2929_p0) }
 0x3e4   : > { %2179 = vst [vmem:[%s4580_s14 + $0x1b8] sm:$0xff] %v5137_v45  ;;  %2180 = vst [vmem:[%s4580_s14 + $0x1c0] sm:$0xff] %v5138_v14  ;;  %v5139_v36 = vld [vmem:[#allocation19_spill] sm:$0xff] }
 0x3e5   : > { %2182 = vst [vmem:[%s4580_s14 + $0x1d0] sm:$0xff] %v5139_v36  ;;  %2184 = vst [vmem:[%s4580_s14 + $0x1e0] sm:$0xff] %v4568_v20 }
 0x3e6   : > { %2185 = vst [vmem:[%s4580_s14 + $0x1e8] sm:$0xff] %v4574_v4  ;;  %2186 = vst [vmem:[%s4580_s14 + $0x1f0] sm:$0xff] %v4571_v33 }
 0x3e7   : > { %2187 = vst [vmem:[%s4580_s14 + $0x1f8] sm:$0xff] %v4577_v39 }
 0x3e8 PF: > { %p2930_p1 = scmp.le.s32.totalorder %s3661_s30, 0 }
 0x3e9   : > { %v2192_v16 = vld [vmem:[%s4580_s14] sm:$0xff] (!%p2930_p1)  ;;  %v2193_v17 = vld [vmem:[%s4580_s14 + $0x8] sm:$0xff] (!%p2930_p1)  ;;  %v2194_v42 = vld [vmem:[%s4580_s14 + $0x10] sm:$0xff] (!%p2930_p1) }
 0x3ea   : > { %2191 = sbr.rel (%p2930_p1) target bundleno = 1039 (0x40f), region = 56  ;;  %v2256_v43 = vadd.f32 (!%p2930_p1), %v2192_v16, %v4388_v63  ;;  %v2257_v21 = vadd.f32 (!%p2930_p1), %v2193_v17, %v4394_v61  ;;  %v2258_v28 = vadd.f32 (!%p2930_p1), %v2194_v42, %v4391_v8  ;;  %v2195_v13 = vld [vmem:[%s4580_s14 + $0x18] sm:$0xff] (!%p2930_p1)  ;;  %v2196_v45 = vld [vmem:[%s4580_s14 + $0x20] sm:$0xff] (!%p2930_p1)  ;;  %v2197_v14 = vld [vmem:[%s4580_s14 + $0x28] sm:$0xff] (!%p2930_p1) }
 0x3eb   : > { %v2259_v36 = vadd.f32 (!%p2930_p1), %v2195_v13, %v4397_v18  ;;  %v2260_v39 = vadd.f32 (!%p2930_p1), %v2196_v45, %v4400_v27  ;;  %v2261_v33 = vadd.f32 (!%p2930_p1), %v2197_v14, %v4406_v31  ;;  %v2198_v63 = vld [vmem:[%s4580_s14 + $0x30] sm:$0xff] (!%p2930_p1)  ;;  %v2199_v16 = vld [vmem:[%s4580_s14 + $0x38] sm:$0xff] (!%p2930_p1)  ;;  %v2200_v61 = vld [vmem:[%s4580_s14 + $0x40] sm:$0xff] (!%p2930_p1) }
 0x3ec   : > { %2320 = vst [vmem:[%s4580_s14] sm:$0xff] (!%p2930_p1), %v2256_v43  ;;  %2321 = vst [vmem:[%s4580_s14 + $0x8] sm:$0xff] (!%p2930_p1), %v2257_v21  ;;  %v2262_v8 = vadd.f32 (!%p2930_p1), %v2198_v63, %v4403_v29  ;;  %v2263_v18 = vadd.f32 (!%p2930_p1), %v2199_v16, %v4409_v38  ;;  %v2264_v27 = vadd.f32 (!%p2930_p1), %v2200_v61, %v4412_v41  ;;  %v2201_v17 = vld [vmem:[%s4580_s14 + $0x48] sm:$0xff] (!%p2930_p1)  ;;  %v2202_v31 = vld [vmem:[%s4580_s14 + $0x50] sm:$0xff] (!%p2930_p1) }
 0x3ed   : > { %2322 = vst [vmem:[%s4580_s14 + $0x10] sm:$0xff] (!%p2930_p1), %v2258_v28  ;;  %v2203_v42 = vld [vmem:[%s4580_s14 + $0x58] sm:$0xff] (!%p2930_p1)  ;;  %2323 = vst [vmem:[%s4580_s14 + $0x18] sm:$0xff] (!%p2930_p1), %v2259_v36  ;;  %v2265_v43 = vadd.f32 (!%p2930_p1), %v2201_v17, %v4418_v37  ;;  %v2266_v29 = vadd.f32 (!%p2930_p1), %v2202_v31, %v4415_v44  ;;  %v2204_v21 = vld [vmem:[%s4580_s14 + $0x60] sm:$0xff] (!%p2930_p1) }
 0x3ee   : > { %2324 = vst [vmem:[%s4580_s14 + $0x20] sm:$0xff] (!%p2930_p1), %v2260_v39  ;;  %2325 = vst [vmem:[%s4580_s14 + $0x28] sm:$0xff] (!%p2930_p1), %v2261_v33  ;;  %v2267_v38 = vadd.f32 (!%p2930_p1), %v2203_v42, %v4421_v49  ;;  %v2205_v41 = vld [vmem:[%s4580_s14 + $0x68] sm:$0xff] (!%p2930_p1)  ;;  %v2206_v28 = vld [vmem:[%s4580_s14 + $0x70] sm:$0xff] (!%p2930_p1)  ;;  %v2268_v39 = vadd.f32 (!%p2930_p1), %v2204_v21, %v4424_v56 }
 0x3ef   : > { %2326 = vst [vmem:[%s4580_s14 + $0x30] sm:$0xff] (!%p2930_p1), %v2262_v8  ;;  %2327 = vst [vmem:[%s4580_s14 + $0x38] sm:$0xff] (!%p2930_p1), %v2263_v18  ;;  %v2269_v37 = vadd.f32 (!%p2930_p1), %v2205_v41, %v4430_v15  ;;  %v2270_v44 = vadd.f32 (!%p2930_p1), %v2206_v28, %v4427_v50  ;;  %v2207_v33 = vld [vmem:[%s4580_s14 + $0x78] sm:$0xff] (!%p2930_p1)  ;;  %v2208_v49 = vld [vmem:[%s4580_s14 + $0x80] sm:$0xff] (!%p2930_p1) }
 0x3f0   : > { %2328 = vst [vmem:[%s4580_s14 + $0x40] sm:$0xff] (!%p2930_p1), %v2264_v27  ;;  %v2209_v13 = vld [vmem:[%s4580_s14 + $0x88] sm:$0xff] (!%p2930_p1)  ;;  %2329 = vst [vmem:[%s4580_s14 + $0x48] sm:$0xff] (!%p2930_p1), %v2265_v43  ;;  %v2271_v45 = vadd.f32 (!%p2930_p1), %v2207_v33, %v4433_v7  ;;  %v2272_v56 = vadd.f32 (!%p2930_p1), %v2208_v49, %v4436_v12  ;;  %v2210_v14 = vld [vmem:[%s4580_s14 + $0x90] sm:$0xff] (!%p2930_p1) }
 0x3f1   : > { %2330 = vst [vmem:[%s4580_s14 + $0x50] sm:$0xff] %v2266_v29  ;;  %2331 = vst [vmem:[%s4580_s14 + $0x58] sm:$0xff] %v2267_v38  ;;  %v2273_v15 = vadd.f32 %v2209_v13, %v4442_v6  ;;  %v2211_v50 = vld [vmem:[%s4580_s14 + $0x98] sm:$0xff]  ;;  %v2212_v36 = vld [vmem:[%s4580_s14 + $0xa0] sm:$0xff]  ;;  %v2274_v63 = vadd.f32 %v2210_v14, %v4439_v11 }
 0x3f2   : > { %2332 = vst [vmem:[%s4580_s14 + $0x60] sm:$0xff] %v2268_v39  ;;  %2333 = vst [vmem:[%s4580_s14 + $0x68] sm:$0xff] %v2269_v37  ;;  %v2275_v7 = vadd.f32 %v2211_v50, %v4445_v25  ;;  %v2276_v12 = vadd.f32 %v2212_v36, %v4448_v30  ;;  %v2213_v16 = vld [vmem:[%s4580_s14 + $0xa8] sm:$0xff]  ;;  %v2214_v6 = vld [vmem:[%s4580_s14 + $0xb0] sm:$0xff] }
 0x3f3   : > { %2334 = vst [vmem:[%s4580_s14 + $0x70] sm:$0xff] %v2270_v44  ;;  %v2215_v61 = vld [vmem:[%s4580_s14 + $0xb8] sm:$0xff]  ;;  %2335 = vst [vmem:[%s4580_s14 + $0x78] sm:$0xff] %v2271_v45  ;;  %v2277_v8 = vadd.f32 %v2213_v16, %v4454_v47  ;;  %v2278_v11 = vadd.f32 %v2214_v6, %v4451_v46  ;;  %v2216_v18 = vld [vmem:[%s4580_s14 + $0xc0] sm:$0xff] }
 0x3f4   : > { %2336 = vst [vmem:[%s4580_s14 + $0x80] sm:$0xff] %v2272_v56  ;;  %2337 = vst [vmem:[%s4580_s14 + $0x88] sm:$0xff] %v2273_v15  ;;  %v2279_v25 = vadd.f32 %v2215_v61, %v4457_v53  ;;  %v2217_v30 = vld [vmem:[%s4580_s14 + $0xc8] sm:$0xff]  ;;  %v2218_v27 = vld [vmem:[%s4580_s14 + $0xd0] sm:$0xff]  ;;  %v2280_v17 = vadd.f32 %v2216_v18, %v4460_v51 }
 0x3f5   : > { %2338 = vst [vmem:[%s4580_s14 + $0x90] sm:$0xff] %v2274_v63  ;;  %2339 = vst [vmem:[%s4580_s14 + $0x98] sm:$0xff] %v2275_v7  ;;  %v2281_v47 = vadd.f32 %v2217_v30, %v4466_v1  ;;  %v2282_v46 = vadd.f32 %v2218_v27, %v4463_v19  ;;  %v2219_v31 = vld [vmem:[%s4580_s14 + $0xd8] sm:$0xff]  ;;  %v2220_v53 = vld [vmem:[%s4580_s14 + $0xe0] sm:$0xff] }
 0x3f6   : > { %2340 = vst [vmem:[%s4580_s14 + $0xa0] sm:$0xff] %v2276_v12  ;;  %v2221_v42 = vld [vmem:[%s4580_s14 + $0xe8] sm:$0xff]  ;;  %2341 = vst [vmem:[%s4580_s14 + $0xa8] sm:$0xff] %v2277_v8  ;;  %v2283_v43 = vadd.f32 %v2219_v31, %v4469_v3  ;;  %v2284_v51 = vadd.f32 %v2220_v53, %v4472_v24  ;;  %v2222_v29 = vld [vmem:[%s4580_s14 + $0xf0] sm:$0xff] }
 0x3f7   : > { %2342 = vst [vmem:[%s4580_s14 + $0xb0] sm:$0xff] %v2278_v11  ;;  %2343 = vst [vmem:[%s4580_s14 + $0xb8] sm:$0xff] %v2279_v25  ;;  %v2285_v1 = vadd.f32 %v2221_v42, %v4478_v26  ;;  %v2223_v19 = vld [vmem:[%s4580_s14 + $0xf8] sm:$0xff]  ;;  %v2224_v38 = vld [vmem:[%s4580_s14 + $0x100] sm:$0xff]  ;;  %v2286_v21 = vadd.f32 %v2222_v29, %v4475_v22 }
 0x3f8   : > { %2344 = vst [vmem:[%s4580_s14 + $0xc0] sm:$0xff] %v2280_v17  ;;  %2345 = vst [vmem:[%s4580_s14 + $0xc8] sm:$0xff] %v2281_v47  ;;  %v2287_v3 = vadd.f32 %v2223_v19, %v4481_v48  ;;  %v2288_v24 = vadd.f32 %v2224_v38, %v4484_v40  ;;  %v2225_v41 = vld [vmem:[%s4580_s14 + $0x108] sm:$0xff]  ;;  %v2226_v26 = vld [vmem:[%s4580_s14 + $0x110] sm:$0xff] }
 0x3f9   : > { %2346 = vst [vmem:[%s4580_s14 + $0xd0] sm:$0xff] %v2282_v46  ;;  %v2227_v28 = vld [vmem:[%s4580_s14 + $0x118] sm:$0xff]  ;;  %2347 = vst [vmem:[%s4580_s14 + $0xd8] sm:$0xff] %v2283_v43  ;;  %v2289_v39 = vadd.f32 %v2225_v41, %v4490_v60  ;;  %v2290_v22 = vadd.f32 %v2226_v26, %v4487_v57  ;;  %v2228_v37 = vld [vmem:[%s4580_s14 + $0x120] sm:$0xff] }
 0x3fa   : > { %2348 = vst [vmem:[%s4580_s14 + $0xe0] sm:$0xff] %v2284_v51  ;;  %2349 = vst [vmem:[%s4580_s14 + $0xe8] sm:$0xff] %v2285_v1  ;;  %v2291_v48 = vadd.f32 %v2227_v28, %v4493_v58  ;;  %v2229_v40 = vld [vmem:[%s4580_s14 + $0x128] sm:$0xff]  ;;  %v2230_v44 = vld [vmem:[%s4580_s14 + $0x130] sm:$0xff]  ;;  %v2292_v33 = vadd.f32 %v2228_v37, %v4496_v10 }
 0x3fb   : > { %2350 = vst [vmem:[%s4580_s14 + $0xf0] sm:$0xff] %v2286_v21  ;;  %2351 = vst [vmem:[%s4580_s14 + $0xf8] sm:$0xff] %v2287_v3  ;;  %v2293_v60 = vadd.f32 %v2229_v40, %v4502_v55  ;;  %v2294_v57 = vadd.f32 %v2230_v44, %v4499_v23  ;;  %v2231_v49 = vld [vmem:[%s4580_s14 + $0x138] sm:$0xff]  ;;  %v2232_v58 = vld [vmem:[%s4580_s14 + $0x140] sm:$0xff] }
 0x3fc   : > { %2352 = vst [vmem:[%s4580_s14 + $0x100] sm:$0xff] %v2288_v24  ;;  %v2233_v13 = vld [vmem:[%s4580_s14 + $0x148] sm:$0xff]  ;;  %2353 = vst [vmem:[%s4580_s14 + $0x108] sm:$0xff] %v2289_v39  ;;  %v2295_v45 = vadd.f32 %v2231_v49, %v4505_v52  ;;  %v2296_v10 = vadd.f32 %v2232_v58, %v4508_v0  ;;  %v2234_v15 = vld [vmem:[%s4580_s14 + $0x150] sm:$0xff] }
 0x3fd   : > { %2354 = vst [vmem:[%s4580_s14 + $0x110] sm:$0xff] %v2290_v22  ;;  %2355 = vst [vmem:[%s4580_s14 + $0x118] sm:$0xff] %v2291_v48  ;;  %v5140_v56 = vld [vmem:[#allocation11_spill] sm:$0xff]  ;;  %v2235_v23 = vld [vmem:[%s4580_s14 + $0x158] sm:$0xff] }
 0x3fe   : > { %v2297_v55 = vadd.f32 %v2233_v13, %v5140_v56  ;;  %v2236_v14 = vld [vmem:[%s4580_s14 + $0x160] sm:$0xff]  ;;  %2356 = vst [vmem:[%s4580_s14 + $0x120] sm:$0xff] %v2292_v33  ;;  %2357 = vst [vmem:[%s4580_s14 + $0x128] sm:$0xff] %v2293_v60  ;;  %v5142_v63 = vld [vmem:[#allocation12_spill] sm:$0xff] }
 0x3ff   : > { %2358 = vst [vmem:[%s4580_s14 + $0x130] sm:$0xff] %v2294_v57  ;;  %v5141_v50 = vld [vmem:[#allocation10_spill] sm:$0xff]  ;;  %v2299_v52 = vadd.f32 %v2235_v23, %v5142_v63  ;;  %v5143_v7 = vld [vmem:[#allocation13_spill] sm:$0xff]  ;;  %v2237_v12 = vld [vmem:[%s4580_s14 + $0x168] sm:$0xff] }
 0x400   : > { %v2298_v36 = vadd.f32 %v2234_v15, %v5141_v50  ;;  %v2300_v0 = vadd.f32 %v2236_v14, %v5143_v7  ;;  %v2238_v16 = vld [vmem:[%s4580_s14 + $0x170] sm:$0xff]  ;;  %v2239_v6 = vld [vmem:[%s4580_s14 + $0x178] sm:$0xff]  ;;  %2359 = vst [vmem:[%s4580_s14 + $0x138] sm:$0xff] %v2295_v45  ;;  %2360 = vst [vmem:[%s4580_s14 + $0x140] sm:$0xff] %v2296_v10  ;;  %v2301_v61 = vadd.f32 %v2237_v12, %v4526_v34 }
 0x401   : > { %2361 = vst [vmem:[%s4580_s14 + $0x148] sm:$0xff] %v2297_v55  ;;  %v5144_v8 = vld [vmem:[#allocation14_spill] sm:$0xff]  ;;  %v2303_v25 = vadd.f32 %v2239_v6, %v4529_v2  ;;  %v2241_v30 = vld [vmem:[%s4580_s14 + $0x188] sm:$0xff]  ;;  %v2242_v27 = vld [vmem:[%s4580_s14 + $0x190] sm:$0xff] }
 0x402   : > { %v2302_v11 = vadd.f32 %v2238_v16, %v5144_v8  ;;  %v2240_v18 = vld [vmem:[%s4580_s14 + $0x180] sm:$0xff]  ;;  %2362 = vst [vmem:[%s4580_s14 + $0x150] sm:$0xff] %v2298_v36  ;;  %2363 = vst [vmem:[%s4580_s14 + $0x158] sm:$0xff] %v2299_v52  ;;  %v2305_v34 = vadd.f32 %v2241_v30, %v4538_v9  ;;  %v2306_v47 = vadd.f32 %v2242_v27, %v4535_v5  ;;  %v2243_v46 = vld [vmem:[%s4580_s14 + $0x198] sm:$0xff] }
 0x403   : > { %2364 = vst [vmem:[%s4580_s14 + $0x160] sm:$0xff] %v2300_v0  ;;  %v2304_v17 = vadd.f32 %v2240_v18, %v4532_v32  ;;  %v2244_v2 = vld [vmem:[%s4580_s14 + $0x1a0] sm:$0xff]  ;;  %v2245_v31 = vld [vmem:[%s4580_s14 + $0x1a8] sm:$0xff]  ;;  %2365 = vst [vmem:[%s4580_s14 + $0x168] sm:$0xff] %v2301_v61  ;;  %v2307_v53 = vadd.f32 %v2243_v46, %v4541_v35 }
 0x404   : > { %2366 = vst [vmem:[%s4580_s14 + $0x170] sm:$0xff] %v2302_v11  ;;  %2367 = vst [vmem:[%s4580_s14 + $0x178] sm:$0xff] %v2303_v25  ;;  %v2308_v32 = vadd.f32 %v2244_v2, %v4544_v54  ;;  %v5145_v42 = vld [vmem:[#allocation16_spill] sm:$0xff]  ;;  %v2247_v5 = vld [vmem:[%s4580_s14 + $0x1b8] sm:$0xff] }
 0x405   : > { %v2309_v9 = vadd.f32 %v2245_v31, %v5145_v42  ;;  %v2246_v43 = vld [vmem:[%s4580_s14 + $0x1b0] sm:$0xff]  ;;  %v2248_v51 = vld [vmem:[%s4580_s14 + $0x1c0] sm:$0xff]  ;;  %2368 = vst [vmem:[%s4580_s14 + $0x180] sm:$0xff] %v2304_v17  ;;  %2369 = vst [vmem:[%s4580_s14 + $0x188] sm:$0xff] %v2305_v34 }
 0x406   : > { %2370 = vst [vmem:[%s4580_s14 + $0x190] sm:$0xff] %v2306_v47  ;;  %v5146_v1 = vld [vmem:[#allocation15_spill] sm:$0xff]  ;;  %v5147_v19 = vld [vmem:[#allocation17_spill] sm:$0xff]  ;;  %v5148_v38 = vld [vmem:[#allocation18_spill] sm:$0xff] }
 0x407   : > { %v2310_v29 = vadd.f32 %v2246_v43, %v5146_v1  ;;  %v2311_v35 = vadd.f32 %v2247_v5, %v5147_v19  ;;  %v2312_v54 = vadd.f32 %v2248_v51, %v5148_v38  ;;  %v2249_v21 = vld [vmem:[%s4580_s14 + $0x1c8] sm:$0xff]  ;;  %v2250_v3 = vld [vmem:[%s4580_s14 + $0x1d0] sm:$0xff]  ;;  %v2251_v24 = vld [vmem:[%s4580_s14 + $0x1d8] sm:$0xff]  ;;  %2371 = vst [vmem:[%s4580_s14 + $0x198] sm:$0xff] %v2307_v53 }
 0x408   : > { %2372 = vst [vmem:[%s4580_s14 + $0x1a0] sm:$0xff] %v2308_v32  ;;  %2373 = vst [vmem:[%s4580_s14 + $0x1a8] sm:$0xff] %v2309_v9  ;;  %v2313_v41 = vadd.f32 %v2249_v21, %v4562_v59  ;;  %v5149_v26 = vld [vmem:[#allocation19_spill] sm:$0xff]  ;;  %v2315_v39 = vadd.f32 %v2251_v24, %v4565_v62  ;;  %v2252_v22 = vld [vmem:[%s4580_s14 + $0x1e0] sm:$0xff] }
 0x409   : > { %v2314_v28 = vadd.f32 %v2250_v3, %v5149_v26  ;;  %v2253_v48 = vld [vmem:[%s4580_s14 + $0x1e8] sm:$0xff]  ;;  %v2254_v37 = vld [vmem:[%s4580_s14 + $0x1f0] sm:$0xff]  ;;  %2374 = vst [vmem:[%s4580_s14 + $0x1b0] sm:$0xff] %v2310_v29  ;;  %2375 = vst [vmem:[%s4580_s14 + $0x1b8] sm:$0xff] %v2311_v35  ;;  %v2316_v40 = vadd.f32 %v2252_v22, %v4568_v20 }
 0x40a   : > { %2376 = vst [vmem:[%s4580_s14 + $0x1c0] sm:$0xff] %v2312_v54  ;;  %v2317_v44 = vadd.f32 %v2253_v48, %v4574_v4  ;;  %v5150_v33 = vld [vmem:[#allocation20_spill] sm:$0xff]  ;;  %v2255_v60 = vld [vmem:[%s4580_s14 + $0x1f8] sm:$0xff]  ;;  %2377 = vst [vmem:[%s4580_s14 + $0x1c8] sm:$0xff] %v2313_v41 }
 0x40b   : > { %v2318_v59 = vadd.f32 %v2254_v37, %v5150_v33  ;;  %2378 = vst [vmem:[%s4580_s14 + $0x1d0] sm:$0xff] %v2314_v28  ;;  %2379 = vst [vmem:[%s4580_s14 + $0x1d8] sm:$0xff] %v2315_v39  ;;  %v5151_v62 = vld [vmem:[#allocation21_spill] sm:$0xff] }
 0x40c   : > { %v2319_v57 = vadd.f32 %v2255_v60, %v5151_v62  ;;  %2380 = vst [vmem:[%s4580_s14 + $0x1e0] sm:$0xff] %v2316_v40  ;;  %2381 = vst [vmem:[%s4580_s14 + $0x1e8] sm:$0xff] %v2317_v44 }
 0x40d   : > { %2382 = vst [vmem:[%s4580_s14 + $0x1f0] sm:$0xff] %v2318_v59 }
 0x40e   : > { %2383 = vst [vmem:[%s4580_s14 + $0x1f8] sm:$0xff] %v2319_v57 }
 0x40f PF: > { %p2931_p2 = scmp.ne.s32.totalorder %s3661_s30, 3 }
 0x410   : > { %v2400_v50 = vld [vmem:[%s4580_s14 + $0x60] sm:$0xff] (!%p2931_p2)  ;;  %v2401_v63 = vld [vmem:[%s4580_s14 + $0x68] sm:$0xff] (!%p2931_p2)  ;;  %v2402_v0 = vld [vmem:[%s4580_s14 + $0x70] sm:$0xff] (!%p2931_p2) }
 0x411   : > { %2387 = sbr.rel (%p2931_p2) target bundleno = 1119 (0x45f), region = 60  ;;  %v2388_v20 = vld [vmem:[%s4580_s14] sm:$0xff] (!%p2931_p2)  ;;  %v2389_v4 = vld [vmem:[%s4580_s14 + $0x8] sm:$0xff] (!%p2931_p2)  ;;  %v2403_v6 = vld [vmem:[%s4580_s14 + $0x78] sm:$0xff] (!%p2931_p2) }
 0x412   : > { %v2390_v49 = vld [vmem:[%s4580_s14 + $0x10] sm:$0xff] (!%p2931_p2)  ;;  %3455 = vlog2.f32 (!%p2931_p2), %v2388_v20  ;;  %v2391_v58 = vld [vmem:[%s4580_s14 + $0x18] sm:$0xff] (!%p2931_p2)  ;;  %v2404_v11 = vld [vmem:[%s4580_s14 + $0x80] sm:$0xff] (!%p2931_p2) }
 0x413   : > { %3457 = vlog2.f32 (!%p2931_p2), %v2389_v4  ;;  %v2392_v13 = vld [vmem:[%s4580_s14 + $0x20] sm:$0xff] (!%p2931_p2)  ;;  %v2393_v45 = vld [vmem:[%s4580_s14 + $0x28] sm:$0xff] (!%p2931_p2)  ;;  %v2406_v34 = vld [vmem:[%s4580_s14 + $0x90] sm:$0xff] (!%p2931_p2) }
 0x414   : > { %3459 = vlog2.f32 (!%p2931_p2), %v2390_v49  ;;  %v2394_v10 = vld [vmem:[%s4580_s14 + $0x30] sm:$0xff] (!%p2931_p2)  ;;  %v2395_v56 = vld [vmem:[%s4580_s14 + $0x38] sm:$0xff] (!%p2931_p2)  ;;  %v2405_v30 = vld [vmem:[%s4580_s14 + $0x88] sm:$0xff] (!%p2931_p2) }
 0x415   : > { %3461 = vlog2.f32 (!%p2931_p2), %v2391_v58  ;;  %v2396_v55 = vld [vmem:[%s4580_s14 + $0x40] sm:$0xff] (!%p2931_p2)  ;;  %v2397_v15 = vld [vmem:[%s4580_s14 + $0x48] sm:$0xff] (!%p2931_p2)  ;;  %v2407_v2 = vld [vmem:[%s4580_s14 + $0x98] sm:$0xff] (!%p2931_p2) }
 0x416   : > { %3463 = vlog2.f32 (!%p2931_p2), %v2392_v13  ;;  %v2398_v23 = vld [vmem:[%s4580_s14 + $0x50] sm:$0xff] (!%p2931_p2)  ;;  %v2399_v14 = vld [vmem:[%s4580_s14 + $0x58] sm:$0xff] (!%p2931_p2)  ;;  %v2408_v32 = vld [vmem:[%s4580_s14 + $0xa0] sm:$0xff] (!%p2931_p2) }
 0x417   : > { %3465 = vlog2.f32 (!%p2931_p2), %v2393_v45  ;;  %v2409_v43 = vld [vmem:[%s4580_s14 + $0xa8] sm:$0xff] (!%p2931_p2)  ;;  %v2410_v1 = vld [vmem:[%s4580_s14 + $0xb0] sm:$0xff] (!%p2931_p2)  ;;  %v2411_v35 = vld [vmem:[%s4580_s14 + $0xb8] sm:$0xff] (!%p2931_p2) }
 0x418   : > { %3467 = vlog2.f32 %v2394_v10  ;;  %v2412_v21 = vld [vmem:[%s4580_s14 + $0xc0] sm:$0xff]  ;;  %v2413_v41 = vld [vmem:[%s4580_s14 + $0xc8] sm:$0xff]  ;;  %v2414_v39 = vld [vmem:[%s4580_s14 + $0xd0] sm:$0xff] }
 0x419   : > { %3469 = vlog2.f32 %v2395_v56  ;;  %v2415_v37 = vld [vmem:[%s4580_s14 + $0xd8] sm:$0xff]  ;;  %v2416_v33 = vld [vmem:[%s4580_s14 + $0xe0] sm:$0xff]  ;;  %v2417_v62 = vld [vmem:[%s4580_s14 + $0xe8] sm:$0xff] }
 0x41a   : > { %3471 = vlog2.f32 %v2396_v55  ;;  %v2418_v4 = vld [vmem:[%s4580_s14 + $0xf0] sm:$0xff]  ;;  %v2419_v13 = vld [vmem:[%s4580_s14 + $0xf8] sm:$0xff]  ;;  %v2420_v56 = vld [vmem:[%s4580_s14 + $0x100] sm:$0xff] }
 0x41b   : > { %3473 = vlog2.f32 %v2397_v15 }
 0x41c   : > { %v3456_v36 = vpop.eup %3455  ;;  %3475 = vlog2.f32 %v2398_v23  ;;  %v2421_v23 = vld [vmem:[%s4580_s14 + $0x108] sm:$0xff] }
 0x41d   : > { %v3458_v52 = vpop.eup %3457  ;;  %v2453_v7 = vmul.f32 0.6931472, %v3456_v36  ;;  %3477 = vlog2.f32 %v2399_v14  ;;  %v2422_v36 = vld [vmem:[%s4580_s14 + $0x110] sm:$0xff] }
 0x41e   : > { %v3460_v12 = vpop.eup %3459  ;;  %v2455_v16 = vmul.f32 0.6931472, %v3458_v52  ;;  %3479 = vlog2.f32 %v2400_v50 }
 0x41f   : > { %v3462_v61 = vpop.eup %3461  ;;  %2580 = vst [vmem:[%s4580_s14] sm:$0xff] %v2453_v7  ;;  %v2457_v8 = vmul.f32 0.6931472, %v3460_v12  ;;  %3481 = vlog2.f32 %v2401_v63  ;;  %v2423_v7 = vld [vmem:[%s4580_s14 + $0x118] sm:$0xff] }
 0x420   : > { %v3464_v25 = vpop.eup %3463  ;;  %2581 = vst [vmem:[%s4580_s14 + $0x8] sm:$0xff] %v2455_v16  ;;  %v2459_v18 = vmul.f32 0.6931472, %v3462_v61  ;;  %3483 = vlog2.f32 %v2402_v0  ;;  %v2424_v16 = vld [vmem:[%s4580_s14 + $0x120] sm:$0xff] }
 0x421   : > { %v3466_v27 = vpop.eup %3465  ;;  %2582 = vst [vmem:[%s4580_s14 + $0x10] sm:$0xff] %v2457_v8  ;;  %v2461_v17 = vmul.f32 0.6931472, %v3464_v25  ;;  %3485 = vlog2.f32 %v2403_v6  ;;  %v2425_v8 = vld [vmem:[%s4580_s14 + $0x128] sm:$0xff] }
 0x422   : > { %v3468_v47 = vpop.eup %3467  ;;  %2583 = vst [vmem:[%s4580_s14 + $0x18] sm:$0xff] %v2459_v18  ;;  %v2463_v46 = vmul.f32 0.6931472, %v3466_v27  ;;  %3487 = vlog2.f32 %v2404_v11  ;;  %v2426_v18 = vld [vmem:[%s4580_s14 + $0x130] sm:$0xff] }
 0x423   : > { %v3470_v31 = vpop.eup %3469  ;;  %2584 = vst [vmem:[%s4580_s14 + $0x20] sm:$0xff] %v2461_v17  ;;  %v2465_v53 = vmul.f32 0.6931472, %v3468_v47  ;;  %3489 = vlog2.f32 %v2405_v30  ;;  %v2427_v17 = vld [vmem:[%s4580_s14 + $0x138] sm:$0xff] }
 0x424   : > { %v3472_v42 = vpop.eup %3471  ;;  %2585 = vst [vmem:[%s4580_s14 + $0x28] sm:$0xff] %v2463_v46  ;;  %v2467_v9 = vmul.f32 0.6931472, %v3470_v31  ;;  %3491 = vlog2.f32 %v2406_v34  ;;  %v2428_v46 = vld [vmem:[%s4580_s14 + $0x140] sm:$0xff] }
 0x425   : > { %v3474_v5 = vpop.eup %3473  ;;  %2586 = vst [vmem:[%s4580_s14 + $0x30] sm:$0xff] %v2465_v53  ;;  %v2469_v51 = vmul.f32 0.6931472, %v3472_v42  ;;  %3493 = vlog2.f32 %v2407_v2  ;;  %v2429_v53 = vld [vmem:[%s4580_s14 + $0x148] sm:$0xff] }
 0x426   : > { %v3476_v29 = vpop.eup %3475  ;;  %2587 = vst [vmem:[%s4580_s14 + $0x38] sm:$0xff] %v2467_v9  ;;  %v2471_v19 = vmul.f32 0.6931472, %v3474_v5  ;;  %3495 = vlog2.f32 %v2408_v32  ;;  %v2430_v9 = vld [vmem:[%s4580_s14 + $0x150] sm:$0xff] }
 0x427   : > { %v3478_v38 = vpop.eup %3477  ;;  %2588 = vst [vmem:[%s4580_s14 + $0x40] sm:$0xff] %v2469_v51  ;;  %v2473_v54 = vmul.f32 0.6931472, %v3476_v29  ;;  %3497 = vlog2.f32 %v2409_v43  ;;  %v2431_v51 = vld [vmem:[%s4580_s14 + $0x158] sm:$0xff] }
 0x428   : > { %v3480_v3 = vpop.eup %3479  ;;  %2589 = vst [vmem:[%s4580_s14 + $0x48] sm:$0xff] %v2471_v19  ;;  %v2475_v24 = vmul.f32 0.6931472, %v3478_v38  ;;  %3499 = vlog2.f32 %v2410_v1  ;;  %v2432_v19 = vld [vmem:[%s4580_s14 + $0x160] sm:$0xff] }
 0x429   : > { %v3482_v26 = vpop.eup %3481  ;;  %2590 = vst [vmem:[%s4580_s14 + $0x50] sm:$0xff] %v2473_v54  ;;  %v2477_v28 = vmul.f32 0.6931472, %v3480_v3  ;;  %3501 = vlog2.f32 %v2411_v35  ;;  %v2433_v54 = vld [vmem:[%s4580_s14 + $0x168] sm:$0xff] }
 0x42a   : > { %v3484_v22 = vpop.eup %3483  ;;  %2591 = vst [vmem:[%s4580_s14 + $0x58] sm:$0xff] %v2475_v24  ;;  %v2479_v48 = vmul.f32 0.6931472, %v3482_v26  ;;  %3503 = vlog2.f32 %v2412_v21  ;;  %v2434_v24 = vld [vmem:[%s4580_s14 + $0x170] sm:$0xff] }
 0x42b   : > { %v3486_v40 = vpop.eup %3485  ;;  %2592 = vst [vmem:[%s4580_s14 + $0x60] sm:$0xff] %v2477_v28  ;;  %v2481_v44 = vmul.f32 0.6931472, %v3484_v22  ;;  %3505 = vlog2.f32 %v2413_v41  ;;  %v2435_v28 = vld [vmem:[%s4580_s14 + $0x178] sm:$0xff] }
 0x42c   : > { %v3488_v59 = vpop.eup %3487  ;;  %2593 = vst [vmem:[%s4580_s14 + $0x68] sm:$0xff] %v2479_v48  ;;  %v2483_v60 = vmul.f32 0.6931472, %v3486_v40  ;;  %3507 = vlog2.f32 %v2414_v39  ;;  %v2436_v48 = vld [vmem:[%s4580_s14 + $0x180] sm:$0xff] }
 0x42d   : > { %v3490_v57 = vpop.eup %3489  ;;  %2594 = vst [vmem:[%s4580_s14 + $0x70] sm:$0xff] %v2481_v44  ;;  %v2485_v20 = vmul.f32 0.6931472, %v3488_v59  ;;  %3509 = vlog2.f32 %v2415_v37  ;;  %v2437_v44 = vld [vmem:[%s4580_s14 + $0x188] sm:$0xff] }
 0x42e   : > { %v3492_v49 = vpop.eup %3491  ;;  %2595 = vst [vmem:[%s4580_s14 + $0x78] sm:$0xff] %v2483_v60  ;;  %v2487_v58 = vmul.f32 0.6931472, %v3490_v57  ;;  %3511 = vlog2.f32 %v2416_v33  ;;  %v2438_v60 = vld [vmem:[%s4580_s14 + $0x190] sm:$0xff] }
 0x42f   : > { %v3494_v45 = vpop.eup %3493  ;;  %2596 = vst [vmem:[%s4580_s14 + $0x80] sm:$0xff] %v2485_v20  ;;  %v2489_v10 = vmul.f32 0.6931472, %v3492_v49  ;;  %3513 = vlog2.f32 %v2417_v62  ;;  %v2439_v20 = vld [vmem:[%s4580_s14 + $0x198] sm:$0xff] }
 0x430   : > { %v3496_v55 = vpop.eup %3495  ;;  %2597 = vst [vmem:[%s4580_s14 + $0x88] sm:$0xff] %v2487_v58  ;;  %v2491_v15 = vmul.f32 0.6931472, %v3494_v45  ;;  %3515 = vlog2.f32 %v2418_v4  ;;  %v2440_v58 = vld [vmem:[%s4580_s14 + $0x1a0] sm:$0xff] }
 0x431   : > { %v3498_v14 = vpop.eup %3497  ;;  %2598 = vst [vmem:[%s4580_s14 + $0x90] sm:$0xff] %v2489_v10  ;;  %v2493_v50 = vmul.f32 0.6931472, %v3496_v55  ;;  %3517 = vlog2.f32 %v2419_v13  ;;  %v2441_v10 = vld [vmem:[%s4580_s14 + $0x1a8] sm:$0xff] }
 0x432   : > { %v3500_v63 = vpop.eup %3499  ;;  %2599 = vst [vmem:[%s4580_s14 + $0x98] sm:$0xff] %v2491_v15  ;;  %v2495_v52 = vmul.f32 0.6931472, %v3498_v14  ;;  %3519 = vlog2.f32 %v2420_v56  ;;  %v2442_v15 = vld [vmem:[%s4580_s14 + $0x1b0] sm:$0xff] }
 0x433   : > { %v3502_v0 = vpop.eup %3501  ;;  %2600 = vst [vmem:[%s4580_s14 + $0xa0] sm:$0xff] %v2493_v50  ;;  %v2497_v12 = vmul.f32 0.6931472, %v3500_v63  ;;  %3521 = vlog2.f32 %v2421_v23  ;;  %v2443_v50 = vld [vmem:[%s4580_s14 + $0x1b8] sm:$0xff] }
 0x434   : > { %v3504_v6 = vpop.eup %3503  ;;  %2601 = vst [vmem:[%s4580_s14 + $0xa8] sm:$0xff] %v2495_v52  ;;  %v2499_v61 = vmul.f32 0.6931472, %v3502_v0  ;;  %3523 = vlog2.f32 %v2422_v36  ;;  %v2444_v52 = vld [vmem:[%s4580_s14 + $0x1c0] sm:$0xff] }
 0x435   : > { %v3506_v11 = vpop.eup %3505  ;;  %2602 = vst [vmem:[%s4580_s14 + $0xb0] sm:$0xff] %v2497_v12  ;;  %v2501_v25 = vmul.f32 0.6931472, %v3504_v6  ;;  %3525 = vlog2.f32 %v2423_v7  ;;  %v2445_v12 = vld [vmem:[%s4580_s14 + $0x1c8] sm:$0xff] }
 0x436   : > { %v3508_v30 = vpop.eup %3507  ;;  %2603 = vst [vmem:[%s4580_s14 + $0xb8] sm:$0xff] %v2499_v61  ;;  %v2503_v27 = vmul.f32 0.6931472, %v3506_v11  ;;  %3527 = vlog2.f32 %v2424_v16  ;;  %v2446_v61 = vld [vmem:[%s4580_s14 + $0x1d0] sm:$0xff] }
 0x437   : > { %v3510_v34 = vpop.eup %3509  ;;  %2604 = vst [vmem:[%s4580_s14 + $0xc0] sm:$0xff] %v2501_v25  ;;  %v2505_v47 = vmul.f32 0.6931472, %v3508_v30  ;;  %3529 = vlog2.f32 %v2425_v8  ;;  %v2447_v25 = vld [vmem:[%s4580_s14 + $0x1d8] sm:$0xff] }
 0x438   : > { %v3512_v2 = vpop.eup %3511  ;;  %2605 = vst [vmem:[%s4580_s14 + $0xc8] sm:$0xff] %v2503_v27  ;;  %v2507_v31 = vmul.f32 0.6931472, %v3510_v34  ;;  %3531 = vlog2.f32 %v2426_v18  ;;  %v2448_v27 = vld [vmem:[%s4580_s14 + $0x1e0] sm:$0xff] }
 0x439   : > { %v3514_v32 = vpop.eup %3513  ;;  %2606 = vst [vmem:[%s4580_s14 + $0xd0] sm:$0xff] %v2505_v47  ;;  %v2509_v42 = vmul.f32 0.6931472, %v3512_v2  ;;  %3533 = vlog2.f32 %v2427_v17  ;;  %v2449_v47 = vld [vmem:[%s4580_s14 + $0x1e8] sm:$0xff] }
 0x43a   : > { %v3516_v43 = vpop.eup %3515  ;;  %2607 = vst [vmem:[%s4580_s14 + $0xd8] sm:$0xff] %v2507_v31  ;;  %v2511_v5 = vmul.f32 0.6931472, %v3514_v32  ;;  %3535 = vlog2.f32 %v2428_v46  ;;  %v2450_v31 = vld [vmem:[%s4580_s14 + $0x1f0] sm:$0xff] }
 0x43b   : > { %v3518_v1 = vpop.eup %3517  ;;  %2608 = vst [vmem:[%s4580_s14 + $0xe0] sm:$0xff] %v2509_v42  ;;  %v2513_v29 = vmul.f32 0.6931472, %v3516_v43  ;;  %3537 = vlog2.f32 %v2429_v53  ;;  %v2451_v42 = vld [vmem:[%s4580_s14 + $0x1f8] sm:$0xff] }
 0x43c   : > { %v3520_v35 = vpop.eup %3519  ;;  %2609 = vst [vmem:[%s4580_s14 + $0xe8] sm:$0xff] %v2511_v5  ;;  %v2515_v38 = vmul.f32 0.6931472, %v3518_v1  ;;  %3539 = vlog2.f32 %v2430_v9 }
 0x43d   : > { %v3522_v21 = vpop.eup %3521  ;;  %2610 = vst [vmem:[%s4580_s14 + $0xf0] sm:$0xff] %v2513_v29  ;;  %v2517_v3 = vmul.f32 0.6931472, %v3520_v35  ;;  %3541 = vlog2.f32 %v2431_v51 }
 0x43e   : > { %v3524_v41 = vpop.eup %3523  ;;  %2611 = vst [vmem:[%s4580_s14 + $0xf8] sm:$0xff] %v2515_v38  ;;  %v2519_v26 = vmul.f32 0.6931472, %v3522_v21  ;;  %3543 = vlog2.f32 %v2432_v19 }
 0x43f   : > { %v3526_v39 = vpop.eup %3525  ;;  %2612 = vst [vmem:[%s4580_s14 + $0x100] sm:$0xff] %v2517_v3  ;;  %v2521_v22 = vmul.f32 0.6931472, %v3524_v41  ;;  %3545 = vlog2.f32 %v2433_v54 }
 0x440   : > { %v3528_v37 = vpop.eup %3527  ;;  %2613 = vst [vmem:[%s4580_s14 + $0x108] sm:$0xff] %v2519_v26  ;;  %v2523_v40 = vmul.f32 0.6931472, %v3526_v39  ;;  %3547 = vlog2.f32 %v2434_v24 }
 0x441   : > { %v3530_v33 = vpop.eup %3529  ;;  %2614 = vst [vmem:[%s4580_s14 + $0x110] sm:$0xff] %v2521_v22  ;;  %v2525_v59 = vmul.f32 0.6931472, %v3528_v37  ;;  %3549 = vlog2.f32 %v2435_v28 }
 0x442   : > { %v3532_v62 = vpop.eup %3531  ;;  %2615 = vst [vmem:[%s4580_s14 + $0x118] sm:$0xff] %v2523_v40  ;;  %v2527_v57 = vmul.f32 0.6931472, %v3530_v33  ;;  %3551 = vlog2.f32 %v2436_v48 }
 0x443   : > { %v3534_v4 = vpop.eup %3533  ;;  %2616 = vst [vmem:[%s4580_s14 + $0x120] sm:$0xff] %v2525_v59  ;;  %v2529_v49 = vmul.f32 0.6931472, %v3532_v62  ;;  %3553 = vlog2.f32 %v2437_v44 }
 0x444   : > { %v3536_v13 = vpop.eup %3535  ;;  %2617 = vst [vmem:[%s4580_s14 + $0x128] sm:$0xff] %v2527_v57  ;;  %v2531_v45 = vmul.f32 0.6931472, %v3534_v4  ;;  %3555 = vlog2.f32 %v2438_v60 }
 0x445   : > { %v3538_v56 = vpop.eup %3537  ;;  %2618 = vst [vmem:[%s4580_s14 + $0x130] sm:$0xff] %v2529_v49  ;;  %v2533_v55 = vmul.f32 0.6931472, %v3536_v13  ;;  %3557 = vlog2.f32 %v2439_v20 }
 0x446   : > { %v3540_v23 = vpop.eup %3539  ;;  %2619 = vst [vmem:[%s4580_s14 + $0x138] sm:$0xff] %v2531_v45  ;;  %v2535_v14 = vmul.f32 0.6931472, %v3538_v56  ;;  %3559 = vlog2.f32 %v2440_v58 }
 0x447   : > { %v3542_v36 = vpop.eup %3541  ;;  %2620 = vst [vmem:[%s4580_s14 + $0x140] sm:$0xff] %v2533_v55  ;;  %v2537_v63 = vmul.f32 0.6931472, %v3540_v23  ;;  %3561 = vlog2.f32 %v2441_v10 }
 0x448   : > { %v3544_v7 = vpop.eup %3543  ;;  %2621 = vst [vmem:[%s4580_s14 + $0x148] sm:$0xff] %v2535_v14  ;;  %v2539_v0 = vmul.f32 0.6931472, %v3542_v36  ;;  %3563 = vlog2.f32 %v2442_v15 }
 0x449   : > { %v3546_v16 = vpop.eup %3545  ;;  %2622 = vst [vmem:[%s4580_s14 + $0x150] sm:$0xff] %v2537_v63  ;;  %v2541_v6 = vmul.f32 0.6931472, %v3544_v7  ;;  %3565 = vlog2.f32 %v2443_v50 }
 0x44a   : > { %v3548_v8 = vpop.eup %3547  ;;  %2623 = vst [vmem:[%s4580_s14 + $0x158] sm:$0xff] %v2539_v0  ;;  %v2543_v11 = vmul.f32 0.6931472, %v3546_v16  ;;  %3567 = vlog2.f32 %v2444_v52 }
 0x44b   : > { %v3550_v18 = vpop.eup %3549  ;;  %2624 = vst [vmem:[%s4580_s14 + $0x160] sm:$0xff] %v2541_v6  ;;  %v2545_v30 = vmul.f32 0.6931472, %v3548_v8  ;;  %3569 = vlog2.f32 %v2445_v12 }
 0x44c   : > { %v3552_v17 = vpop.eup %3551  ;;  %2625 = vst [vmem:[%s4580_s14 + $0x168] sm:$0xff] %v2543_v11  ;;  %v2547_v34 = vmul.f32 0.6931472, %v3550_v18  ;;  %3571 = vlog2.f32 %v2446_v61 }
 0x44d   : > { %v3554_v46 = vpop.eup %3553  ;;  %2626 = vst [vmem:[%s4580_s14 + $0x170] sm:$0xff] %v2545_v30  ;;  %v2549_v2 = vmul.f32 0.6931472, %v3552_v17  ;;  %3573 = vlog2.f32 %v2447_v25 }
 0x44e   : > { %v3556_v53 = vpop.eup %3555  ;;  %2627 = vst [vmem:[%s4580_s14 + $0x178] sm:$0xff] %v2547_v34  ;;  %v2551_v32 = vmul.f32 0.6931472, %v3554_v46  ;;  %3575 = vlog2.f32 %v2448_v27 }
 0x44f   : > { %v3558_v9 = vpop.eup %3557  ;;  %2628 = vst [vmem:[%s4580_s14 + $0x180] sm:$0xff] %v2549_v2  ;;  %v2553_v43 = vmul.f32 0.6931472, %v3556_v53  ;;  %3577 = vlog2.f32 %v2449_v47 }
 0x450   : > { %v3560_v5 = vpop.eup %3559  ;;  %2629 = vst [vmem:[%s4580_s14 + $0x188] sm:$0xff] %v2551_v32  ;;  %v2555_v51 = vmul.f32 0.6931472, %v3558_v9  ;;  %3579 = vlog2.f32 %v2450_v31 }
 0x451   : > { %v3562_v1 = vpop.eup %3561  ;;  %2630 = vst [vmem:[%s4580_s14 + $0x190] sm:$0xff] %v2553_v43  ;;  %v2557_v29 = vmul.f32 0.6931472, %v3560_v5  ;;  %3581 = vlog2.f32 %v2451_v42 }
 0x452   : > { %v3564_v19 = vpop.eup %3563  ;;  %2631 = vst [vmem:[%s4580_s14 + $0x198] sm:$0xff] %v2555_v51  ;;  %v2559_v35 = vmul.f32 0.6931472, %v3562_v1 }
 0x453   : > { %v3566_v38 = vpop.eup %3565  ;;  %2632 = vst [vmem:[%s4580_s14 + $0x1a0] sm:$0xff] %v2557_v29  ;;  %v2561_v54 = vmul.f32 0.6931472, %v3564_v19 }
 0x454   : > { %v3568_v21 = vpop.eup %3567  ;;  %2633 = vst [vmem:[%s4580_s14 + $0x1a8] sm:$0xff] %v2559_v35  ;;  %v2563_v3 = vmul.f32 0.6931472, %v3566_v38 }
 0x455   : > { %v3570_v24 = vpop.eup %3569  ;;  %2634 = vst [vmem:[%s4580_s14 + $0x1b0] sm:$0xff] %v2561_v54  ;;  %v2565_v41 = vmul.f32 0.6931472, %v3568_v21 }
 0x456   : > { %v3572_v26 = vpop.eup %3571  ;;  %2635 = vst [vmem:[%s4580_s14 + $0x1b8] sm:$0xff] %v2563_v3  ;;  %v2567_v28 = vmul.f32 0.6931472, %v3570_v24 }
 0x457   : > { %v3574_v39 = vpop.eup %3573  ;;  %2636 = vst [vmem:[%s4580_s14 + $0x1c0] sm:$0xff] %v2565_v41  ;;  %v2569_v22 = vmul.f32 0.6931472, %v3572_v26 }
 0x458   : > { %v3576_v48 = vpop.eup %3575  ;;  %2637 = vst [vmem:[%s4580_s14 + $0x1c8] sm:$0xff] %v2567_v28  ;;  %v2571_v37 = vmul.f32 0.6931472, %v3574_v39 }
 0x459   : > { %v3578_v40 = vpop.eup %3577  ;;  %2638 = vst [vmem:[%s4580_s14 + $0x1d0] sm:$0xff] %v2569_v22  ;;  %v2573_v44 = vmul.f32 0.6931472, %v3576_v48 }
 0x45a   : > { %v3580_v33 = vpop.eup %3579  ;;  %2639 = vst [vmem:[%s4580_s14 + $0x1d8] sm:$0xff] %v2571_v37  ;;  %v2575_v59 = vmul.f32 0.6931472, %v3578_v40 }
 0x45b   : > { %v3582_v60 = vpop.eup %3581  ;;  %2640 = vst [vmem:[%s4580_s14 + $0x1e0] sm:$0xff] %v2573_v44  ;;  %v2577_v62 = vmul.f32 0.6931472, %v3580_v33 }
 0x45c   : > { %2641 = vst [vmem:[%s4580_s14 + $0x1e8] sm:$0xff] %v2575_v59  ;;  %v2579_v57 = vmul.f32 0.6931472, %v3582_v60 }
 0x45d   : > { %2642 = vst [vmem:[%s4580_s14 + $0x1f0] sm:$0xff] %v2577_v62 }
 0x45e   : > { %2643 = vst [vmem:[%s4580_s14 + $0x1f8] sm:$0xff] %v2579_v57 }
 0x45f PF: > { %s2940_s30 = sshll.u32 %s3665_s9, 13  ;;  %s2669_s11 = sshll.u32 %s4580_s14, 4  ;;  %s5040_s11 = int_to_ptr.vmem [resolvable:$true] %s2669_s11 }
 0x460   : > { %s5037_s16 = scalar_lea.hbm %s5103_s7, %s2940_s30  ;;  %s5152_s19 = sand.u32 1, %s3653_s28  }
 0x461   : > { %s5044_s26 = scalar_lea.sflag [#allocation3], %s5152_s19  ;;  %s3583_s10 = scalar_lea.vmem %s5040_s11, 8192 }
 0x462   : > { %p3584_p4 = scmp.ne.s32.totalorder %s5040_s11, %s3583_s10  ;;  %s3680_s9 = smov [#allocation2]  }
 0x463   : > { %s3587_s25 = sshll.u32 %s3680_s9, 4  ;;  %s3588_s25 = int_to_ptr.vmem [resolvable:$false] %s3587_s25 }
 0x464   : > { %p3585_p5 = pnand %p3584_p4, %p3777_p3  ;;  %s3589_s24 = scalar_lea.vmem %s3588_s25, 16384 }
 0x465   : > { %p3590_p7 = scmp.lt.s32.totalorder %s5040_s11, %s3588_s25  ;;  %p3591_p8 = scmp.lt.s32.totalorder %s3589_s24, %s3583_s10 }
 0x466   : > { %p3586_p6 = pneg %p3585_p5 }
 0x467   : > { %p3592_p10 = por %p3591_p8, %p3590_p7 }
 0x469   : > { %p3593_p11 = pnand %p3592_p10, %p3586_p6 }
 0x46b   : > { %3596 = shalt.err (!%p3593_p11)
}
 0x46c   : > { %s3597_s20 = scalar_lea.hbm %s5037_s16, 8192  ;;  %s3601_s23 = scalar_lea.hbm %s5103_s7, 16384 }
 0x46d   : > { %p3598_p12 = scmp.ne.s32.totalorder %s5037_s16, %s3597_s20  ;;  %p3602_p1 = scmp.lt.u32.totalorder %s5037_s16, %s5103_s7 }
 0x46e   : > { %p3603_p2 = scmp.lt.u32.totalorder %s3601_s23, %s3597_s20  ;;  %p3605_p5 = scmp.lt.u32.totalorder %s3597_s20, %s5037_s16 }
 0x46f   : > { %p3599_p13 = pnand %p3598_p12, %p3777_p3 }
 0x470   : > { %p3604_p4 = por %p3603_p2, %p3602_p1 }
 0x471   : > { %p3600_p0 = pneg %p3599_p13 }
 0x472   : > { %p3606_p6 = por %p3605_p5, %p3604_p4 }
 0x474   : > { %p3607_p7 = pnand %p3606_p6, %p3600_p0 }
 0x476   : > { %3610 = shalt.err (!%p3607_p7)
}
 0x477   : > { %s3681_s13 = smov 512   ;;  %s3682_s15 = smov 32  }
 0x478   : > { %3085 = dma.vmem_to_hbm [thread:$0]  (%p3777_p3), %s5040_s11, 8192, %s5037_s16, %s5044_s26, %s3681_s13, %s3681_s13, %s3682_s15  }
 0x479 PF: > { %p3091_p8 = scmp.ge.s32.totalorder %s3677_s12, 2  ;;  %s2688_s19 = sand.u32 1, %s3649_s27  }
 0x47a   : > { %s2689_s10 = scalar_lea.sflag [#allocation3], %s2688_s19 }
 0x47b   : > { %p3088_p10 = pnand %p3091_p8, %p3787_p9 }
 0x47d   : > { %3644 = dma.done.wait (!%p3088_p10), %s2689_s10, 8192  }
 0x47e   : > { %3646 = vsyncadd (!%p3088_p10), %s2689_s10, 4294959104  ;;  %s22_s12 = sadd.s32 1, %s3677_s12   ;;  %s5153_s9 = sld [smem:[#allocation9_spill]] }
 0x47f   : > { %p19_p11 = scmp.ge.s32.totalorder %s22_s12, 10   ;;  %s5154_s30 = sld [smem:[#allocation5_spill]] }
 0x480   : > { %s5155_s17 = sld [smem:[#allocation6_spill]]  ;;  %s5156_s10 = sld [smem:[#allocation7_spill]] }
 0x481   : > { %s5157_s11 = sld [smem:[#allocation8_spill]]  ;;  %s5158_s27 = smov %s3653_s28 }
 0x482   : > { %s5159_s28 = smov %s3657_s29  ;;  %21 = sbr.rel (!%p19_p11) target bundleno = 5 (0x5), region = 110 }
 0x484   : > { %s5160_s29 = smov %s5153_s9 }
 0x486   : > { %s5161_s9 = smov %s5155_s17 }
 0x489   :  { %2707 = vsyncpa [#allocation3], 1 }
 0x48a   :  { %2709 = vsyncpa [#allocation3 + $0x1], 1 }

</bundles_post_ra>
